<compile_context>
chip_gen: v7x
topology: tpu7x:2x2x1
jax: 0.10.0
libtpu: 0.0.40
codegen_flags: <defaults>
</compile_context>

<pallas_src>
import numpy as np
import jax
import jax.numpy as jnp
from jax import lax
from jax.experimental import pallas as pl
from jax.experimental.pallas import tpu as pltpu

N_EMBD = 256
N_HEAD = 8
BLOCK_SIZE = 1          # torch module registers tril of shape (1, 1) -> T must be 1
LN_EPS = 1e-5


# ----------------------------- kernel helpers -----------------------------

def _layernorm(v, g, b):
    mu = jnp.mean(v, axis=-1, keepdims=True)
    var = jnp.mean((v - mu) ** 2, axis=-1, keepdims=True)
    return (v - mu) * lax.rsqrt(var + LN_EPS) * g + b


# ------------------------------- the kernel -------------------------------

def _decoder_block_kernel(
    x_ref, enc_ref,
    ln1_g_ref, ln1_b_ref, wvp_d_ref, bp_d_ref,
    ln2_gx_ref, ln2_bx_ref, ln2_ge_ref, ln2_be_ref,
    wvp_ex_ref, wvp_ee_ref, bp_e_ref,
    ln3_g_ref, ln3_b_ref, w1_ref, b1_ref, w2_ref, b2_ref,
    out_ref,
):
    x = x_ref[...]
    enc = enc_ref[...]

    # x = x + sa_decoder(ln1(x))
    # T == 1: masked softmax over one key == 1, so concat(head outputs) == value
    # projection; heads @ proj collapses to y1 @ (wv_d @ wp_d) + bp_d.
    y1 = _layernorm(x, ln1_g_ref[...], ln1_b_ref[...]).astype(jnp.bfloat16)
    x = x + (jnp.dot(y1, wvp_d_ref[...], preferred_element_type=jnp.float32)
             + bp_d_ref[...])

    # x = x + sa_encoder_decoder(ln2(cat([x, encoder_output], -1)))
    # LayerNorm over the virtual 512-wide concat via combined half statistics
    # (mathematically identical, no (rows, 512) concat materialized in VMEM).
    mu = 0.5 * (jnp.mean(x, axis=-1, keepdims=True)
                + jnp.mean(enc, axis=-1, keepdims=True))
    var = 0.5 * (jnp.mean((x - mu) ** 2, axis=-1, keepdims=True)
                 + jnp.mean((enc - mu) ** 2, axis=-1, keepdims=True))
    inv = lax.rsqrt(var + LN_EPS)
    y2x = ((x - mu) * inv * ln2_gx_ref[...] + ln2_bx_ref[...]).astype(jnp.bfloat16)
    y2e = ((enc - mu) * inv * ln2_ge_ref[...] + ln2_be_ref[...]).astype(jnp.bfloat16)
    att = (jnp.dot(y2x, wvp_ex_ref[...], preferred_element_type=jnp.float32)
           + jnp.dot(y2e, wvp_ee_ref[...], preferred_element_type=jnp.float32)
           + bp_e_ref[...])
    x = x + att

    # x = x + ffwd(ln3(x))   (Linear -> ReLU -> Linear)
    y3 = _layernorm(x, ln3_g_ref[...], ln3_b_ref[...]).astype(jnp.bfloat16)
    h = jnp.maximum(
        jnp.dot(y3, w1_ref[...], preferred_element_type=jnp.float32) + b1_ref[...],
        0.0).astype(jnp.bfloat16)
    x = x + (jnp.dot(h, w2_ref[...], preferred_element_type=jnp.float32)
             + b2_ref[...])

    out_ref[...] = x.astype(out_ref.dtype)


# ------------------------------ host wrapper -------------------------------

KERNEL_PARAM_ORDER = (
    "ln1_g", "ln1_b", "wvp_d", "bp_d",
    "ln2_gx", "ln2_bx", "ln2_ge", "ln2_be", "wvp_ex", "wvp_ee", "bp_e",
    "ln3_g", "ln3_b", "w1", "b1", "w2", "b2",
)


def prepare_kernel_params(p):
    """One-time host-side fold: drop wq/wk (dead for T==1), fuse wv@wp in f32,
    stream the large matrices as bf16. Done once, outside the per-call path."""
    C = N_EMBD
    wvp_d = (p["wv_d"] @ p["wp_d"]).astype(jnp.bfloat16)          # (C, C)
    wvp_e = p["wv_e"] @ p["wp_e"]                                  # (2C, C) in f32
    return {
        "ln1_g": p["ln1_g"], "ln1_b": p["ln1_b"],
        "wvp_d": wvp_d, "bp_d": p["bp_d"],
        "ln2_gx": p["ln2_g"][:, :C], "ln2_bx": p["ln2_b"][:, :C],
        "ln2_ge": p["ln2_g"][:, C:], "ln2_be": p["ln2_b"][:, C:],
        "wvp_ex": wvp_e[:C].astype(jnp.bfloat16),
        "wvp_ee": wvp_e[C:].astype(jnp.bfloat16),
        "bp_e": p["bp_e"],
        "ln3_g": p["ln3_g"], "ln3_b": p["ln3_b"],
        "w1": p["w1"].astype(jnp.bfloat16), "b1": p["b1"],
        "w2": p["w2"].astype(jnp.bfloat16), "b2": p["b2"],
    }


@jax.jit
def decoder_block_forward(x, enc, kparams):
    B, T, C = x.shape
    rows = B * T
    flat = [kparams[k] for k in KERNEL_PARAM_ORDER]
    vmem = pl.BlockSpec(memory_space=pltpu.MemorySpace.VMEM)
    out = pl.pallas_call(
        _decoder_block_kernel,
        out_shape=jax.ShapeDtypeStruct((rows, C), jnp.float32),
        in_specs=[vmem] * (2 + len(flat)),
        out_specs=vmem,
        compiler_params=pltpu.CompilerParams(
            # ~1.5 MiB of residents; 32 MiB fits every generation incl. v7x (64 MiB VMEM).
            vmem_limit_bytes=32 * 1024 * 1024),
    )(x.reshape(rows, C), enc.reshape(rows, C), *flat)
    return out.reshape(B, T, C)


# ----------------------- deterministic parameter init ----------------------

def init_params(key, n_embd, n_head):
    head_size = n_embd // n_head
    ks = jax.random.split(key, 24)
    s = 0.02

    def w(k, shape):
        return jax.random.normal(k, shape, jnp.float32) * s

    return {
        "ln1_g": 1.0 + 0.1 * jax.random.normal(ks[0], (1, n_embd), jnp.float32),
        "ln1_b": 0.05 * jax.random.normal(ks[1], (1, n_embd), jnp.float32),
        # sa_decoder: 8 heads of size 32 over n_embd=256 (columns grouped per head)
        "wq_d": w(ks[2], (n_embd, n_head * head_size)),
        "wk_d": w(ks[3], (n_embd, n_head * head_size)),
        "wv_d": w(ks[4], (n_embd, n_head * head_size)),
        "wp_d": w(ks[5], (n_embd, n_embd)),
        "bp_d": w(ks[6], (1, n_embd)),
        "ln2_g": 1.0 + 0.1 * jax.random.normal(ks[7], (1, 2 * n_embd), jnp.float32),
        "ln2_b": 0.05 * jax.random.normal(ks[8], (1, 2 * n_embd), jnp.float32),
        # sa_encoder_decoder: 8 heads of size 64 over 2*n_embd=512
        "wq_e": w(ks[9], (2 * n_embd, n_head * 2 * head_size)),
        "wk_e": w(ks[10], (2 * n_embd, n_head * 2 * head_size)),
        "wv_e": w(ks[11], (2 * n_embd, n_head * 2 * head_size)),
        "wp_e": w(ks[12], (2 * n_embd, n_embd)),
        "bp_e": w(ks[13], (1, n_embd)),
        "ln3_g": 1.0 + 0.1 * jax.random.normal(ks[14], (1, n_embd), jnp.float32),
        "ln3_b": 0.05 * jax.random.normal(ks[15], (1, n_embd), jnp.float32),
        # feed-forward: 256 -> 1024 -> 256
        "w1": w(ks[16], (n_embd, 4 * n_embd)),
        "b1": w(ks[17], (1, 4 * n_embd)),
        "w2": w(ks[18], (4 * n_embd, n_embd)),
        "b2": w(ks[19], (1, n_embd)),
    }


# ------------------------------ pure-JAX ref --------------------------------
# Faithful per-head reference (full Q/K/softmax/mask path, f32 weights) used to
# validate the kernel's algebraic simplification and bf16 streaming.

def reference_forward(x, enc, p):
    def ln(v, g, b):
        mu = v.mean(-1, keepdims=True)
        var = ((v - mu) ** 2).mean(-1, keepdims=True)
        return (v - mu) / jnp.sqrt(var + LN_EPS) * g[0] + b[0]

    def mha(y, wq, wk, wv, wp, bp, n_heads):
        _, _, C = y.shape
        hs = wq.shape[1] // n_heads
        q, k, v = y @ wq, y @ wk, y @ wv
        outs = []
        for h in range(n_heads):
            sl = slice(h * hs, (h + 1) * hs)
            wei = (q[..., sl] @ jnp.swapaxes(k[..., sl], -1, -2)) * (C ** -0.5)
            wei = jax.nn.softmax(wei, axis=-1)
            outs.append(wei @ v[..., sl])
        return jnp.concatenate(outs, -1) @ wp + bp[0]

    x = x + mha(ln(x, p["ln1_g"], p["ln1_b"]),
                p["wq_d"], p["wk_d"], p["wv_d"], p["wp_d"], p["bp_d"], N_HEAD)
    z = jnp.concatenate([x, enc], axis=-1)
    x = x + mha(ln(z, p["ln2_g"], p["ln2_b"]),
                p["wq_e"], p["wk_e"], p["wv_e"], p["wp_e"], p["bp_e"], N_HEAD)
    y = ln(x, p["ln3_g"], p["ln3_b"])
    h = jnp.maximum(y @ p["w1"] + p["b1"][0], 0.0)
    return x + h @ p["w2"] + p["b2"][0]


# ----------------------------------- main -----------------------------------

if __name__ == "__main__":
    key = jax.random.PRNGKey(0)
    kx, kenc, kp = jax.random.split(key, 3)

    # block_size == 1 forces T == 1; B = 8 so rows = B*T = 8 fills one f32
    # sublane tile (amortizes the fixed weight DMA / launch cost vs rows=2).
    B, T, C = 8, BLOCK_SIZE, N_EMBD
    x = jax.random.normal(kx, (B, T, C), jnp.float32)
    encoder_output = jax.random.normal(kenc, (B, T, C), jnp.float32)
    params = init_params(kp, N_EMBD, N_HEAD)

    # One-time host-side fold: drop wq/wk, fuse wv@wp, cast big weights to bf16.
    kparams = prepare_kernel_params(params)

    out = decoder_block_forward(x, encoder_output, kparams)
    jax.block_until_ready(out)
    assert out.shape == (B, T, C)

    ref = reference_forward(x, encoder_output, params)
    np.testing.assert_allclose(np.asarray(out), np.asarray(ref), atol=1e-2, rtol=1e-2)

    print("KERNEL_OK")
</pallas_src>

<mosaic_0001>
module attributes {stable_mosaic.version = 11 : i64} {
  func.func @_decoder_block_kernel(%arg0: memref<8x256xf32, #tpu.memory_space<vmem>>, %arg1: memref<8x256xf32, #tpu.memory_space<vmem>>, %arg2: memref<1x256xf32, #tpu.memory_space<vmem>>, %arg3: memref<1x256xf32, #tpu.memory_space<vmem>>, %arg4: memref<256x256xbf16, #tpu.memory_space<vmem>>, %arg5: memref<1x256xf32, #tpu.memory_space<vmem>>, %arg6: memref<1x256xf32, #tpu.memory_space<vmem>>, %arg7: memref<1x256xf32, #tpu.memory_space<vmem>>, %arg8: memref<1x256xf32, #tpu.memory_space<vmem>>, %arg9: memref<1x256xf32, #tpu.memory_space<vmem>>, %arg10: memref<256x256xbf16, #tpu.memory_space<vmem>>, %arg11: memref<256x256xbf16, #tpu.memory_space<vmem>>, %arg12: memref<1x256xf32, #tpu.memory_space<vmem>>, %arg13: memref<1x256xf32, #tpu.memory_space<vmem>>, %arg14: memref<1x256xf32, #tpu.memory_space<vmem>>, %arg15: memref<256x1024xbf16, #tpu.memory_space<vmem>>, %arg16: memref<1x1024xf32, #tpu.memory_space<vmem>>, %arg17: memref<1024x256xbf16, #tpu.memory_space<vmem>>, %arg18: memref<1x256xf32, #tpu.memory_space<vmem>>, %arg19: memref<8x256xf32, #tpu.memory_space<vmem>>) attributes {dimension_semantics = [], scalar_prefetch = 0 : i64, scratch_operands = 0 : i64, tpu.core_type = #tpu.core_type<tc>} {
    %c0 = arith.constant 0 : index
    %c0_0 = arith.constant 0 : index
    %0 = vector.load %arg0[%c0, %c0_0] : memref<8x256xf32, #tpu.memory_space<vmem>>, vector<8x256xf32>
    %c0_1 = arith.constant 0 : index
    %c0_2 = arith.constant 0 : index
    %1 = vector.load %arg1[%c0_1, %c0_2] : memref<8x256xf32, #tpu.memory_space<vmem>>, vector<8x256xf32>
    %c0_3 = arith.constant 0 : index
    %c0_4 = arith.constant 0 : index
    %2 = vector.load %arg2[%c0_3, %c0_4] : memref<1x256xf32, #tpu.memory_space<vmem>>, vector<1x256xf32>
    %c0_5 = arith.constant 0 : index
    %c0_6 = arith.constant 0 : index
    %3 = vector.load %arg3[%c0_5, %c0_6] : memref<1x256xf32, #tpu.memory_space<vmem>>, vector<1x256xf32>
    %cst = arith.constant dense<0.000000e+00> : vector<8xf32>
    %4 = vector.multi_reduction <add>, %0, %cst [1] : vector<8x256xf32> to vector<8xf32>
    %5 = vector.shape_cast %4 : vector<8xf32> to vector<8x1xf32>
    %cst_7 = arith.constant 2.560000e+02 : f32
    %6 = vector.broadcast %cst_7 : f32 to vector<8x1xf32>
    %7 = arith.divf %5, %6 : vector<8x1xf32>
    %8 = vector.broadcast %7 : vector<8x1xf32> to vector<8x256xf32>
    %9 = arith.subf %0, %8 : vector<8x256xf32>
    %10 = arith.mulf %9, %9 : vector<8x256xf32>
    %cst_8 = arith.constant dense<0.000000e+00> : vector<8xf32>
    %11 = vector.multi_reduction <add>, %10, %cst_8 [1] : vector<8x256xf32> to vector<8xf32>
    %12 = vector.shape_cast %11 : vector<8xf32> to vector<8x1xf32>
    %cst_9 = arith.constant 2.560000e+02 : f32
    %13 = vector.broadcast %cst_9 : f32 to vector<8x1xf32>
    %14 = arith.divf %12, %13 : vector<8x1xf32>
    %15 = vector.broadcast %7 : vector<8x1xf32> to vector<8x256xf32>
    %16 = arith.subf %0, %15 : vector<8x256xf32>
    %cst_10 = arith.constant 9.99999974E-6 : f32
    %17 = vector.broadcast %cst_10 : f32 to vector<8x1xf32>
    %18 = arith.addf %14, %17 : vector<8x1xf32>
    %19 = math.rsqrt %18 : vector<8x1xf32>
    %20 = vector.broadcast %19 : vector<8x1xf32> to vector<8x256xf32>
    %21 = arith.mulf %16, %20 : vector<8x256xf32>
    %22 = vector.broadcast %2 : vector<1x256xf32> to vector<8x256xf32>
    %23 = arith.mulf %21, %22 : vector<8x256xf32>
    %24 = vector.broadcast %3 : vector<1x256xf32> to vector<8x256xf32>
    %25 = arith.addf %23, %24 : vector<8x256xf32>
    %26 = arith.truncf %25 : vector<8x256xf32> to vector<8x256xbf16>
    %c0_11 = arith.constant 0 : index
    %c0_12 = arith.constant 0 : index
    %27 = vector.load %arg4[%c0_11, %c0_12] : memref<256x256xbf16, #tpu.memory_space<vmem>>, vector<256x256xbf16>
    %cst_13 = arith.constant dense<0.000000e+00> : vector<8x256xf32>
    %28 = tpu.matmul %26, %27, %cst_13 {dimension_numbers = #tpu.dot_dimension_numbers<[1], [0], [0], [1], [0, 0, 1, 1], [], []>} : vector<8x256xbf16>, vector<256x256xbf16>, vector<8x256xf32> -> vector<8x256xf32>
    %c0_14 = arith.constant 0 : index
    %c0_15 = arith.constant 0 : index
    %29 = vector.load %arg5[%c0_14, %c0_15] : memref<1x256xf32, #tpu.memory_space<vmem>>, vector<1x256xf32>
    %30 = vector.broadcast %29 : vector<1x256xf32> to vector<8x256xf32>
    %31 = arith.addf %28, %30 : vector<8x256xf32>
    %32 = arith.addf %0, %31 : vector<8x256xf32>
    %cst_16 = arith.constant dense<0.000000e+00> : vector<8xf32>
    %33 = vector.multi_reduction <add>, %32, %cst_16 [1] : vector<8x256xf32> to vector<8xf32>
    %34 = vector.shape_cast %33 : vector<8xf32> to vector<8x1xf32>
    %cst_17 = arith.constant 2.560000e+02 : f32
    %35 = vector.broadcast %cst_17 : f32 to vector<8x1xf32>
    %36 = arith.divf %34, %35 : vector<8x1xf32>
    %cst_18 = arith.constant dense<0.000000e+00> : vector<8xf32>
    %37 = vector.multi_reduction <add>, %1, %cst_18 [1] : vector<8x256xf32> to vector<8xf32>
    %38 = vector.shape_cast %37 : vector<8xf32> to vector<8x1xf32>
    %cst_19 = arith.constant 2.560000e+02 : f32
    %39 = vector.broadcast %cst_19 : f32 to vector<8x1xf32>
    %40 = arith.divf %38, %39 : vector<8x1xf32>
    %41 = arith.addf %36, %40 : vector<8x1xf32>
    %cst_20 = arith.constant 5.000000e-01 : f32
    %42 = vector.broadcast %cst_20 : f32 to vector<8x1xf32>
    %43 = arith.mulf %42, %41 : vector<8x1xf32>
    %44 = vector.broadcast %43 : vector<8x1xf32> to vector<8x256xf32>
    %45 = arith.subf %32, %44 : vector<8x256xf32>
    %46 = arith.mulf %45, %45 : vector<8x256xf32>
    %cst_21 = arith.constant dense<0.000000e+00> : vector<8xf32>
    %47 = vector.multi_reduction <add>, %46, %cst_21 [1] : vector<8x256xf32> to vector<8xf32>
    %48 = vector.shape_cast %47 : vector<8xf32> to vector<8x1xf32>
    %cst_22 = arith.constant 2.560000e+02 : f32
    %49 = vector.broadcast %cst_22 : f32 to vector<8x1xf32>
    %50 = arith.divf %48, %49 : vector<8x1xf32>
    %51 = vector.broadcast %43 : vector<8x1xf32> to vector<8x256xf32>
    %52 = arith.subf %1, %51 : vector<8x256xf32>
    %53 = arith.mulf %52, %52 : vector<8x256xf32>
    %cst_23 = arith.constant dense<0.000000e+00> : vector<8xf32>
    %54 = vector.multi_reduction <add>, %53, %cst_23 [1] : vector<8x256xf32> to vector<8xf32>
    %55 = vector.shape_cast %54 : vector<8xf32> to vector<8x1xf32>
    %cst_24 = arith.constant 2.560000e+02 : f32
    %56 = vector.broadcast %cst_24 : f32 to vector<8x1xf32>
    %57 = arith.divf %55, %56 : vector<8x1xf32>
    %58 = arith.addf %50, %57 : vector<8x1xf32>
    %cst_25 = arith.constant 5.000000e-01 : f32
    %59 = vector.broadcast %cst_25 : f32 to vector<8x1xf32>
    %60 = arith.mulf %59, %58 : vector<8x1xf32>
    %cst_26 = arith.constant 9.99999974E-6 : f32
    %61 = vector.broadcast %cst_26 : f32 to vector<8x1xf32>
    %62 = arith.addf %60, %61 : vector<8x1xf32>
    %63 = math.rsqrt %62 : vector<8x1xf32>
    %64 = vector.broadcast %43 : vector<8x1xf32> to vector<8x256xf32>
    %65 = arith.subf %32, %64 : vector<8x256xf32>
    %66 = vector.broadcast %63 : vector<8x1xf32> to vector<8x256xf32>
    %67 = arith.mulf %65, %66 : vector<8x256xf32>
    %c0_27 = arith.constant 0 : index
    %c0_28 = arith.constant 0 : index
    %68 = vector.load %arg6[%c0_27, %c0_28] : memref<1x256xf32, #tpu.memory_space<vmem>>, vector<1x256xf32>
    %69 = vector.broadcast %68 : vector<1x256xf32> to vector<8x256xf32>
    %70 = arith.mulf %67, %69 : vector<8x256xf32>
    %c0_29 = arith.constant 0 : index
    %c0_30 = arith.constant 0 : index
    %71 = vector.load %arg7[%c0_29, %c0_30] : memref<1x256xf32, #tpu.memory_space<vmem>>, vector<1x256xf32>
    %72 = vector.broadcast %71 : vector<1x256xf32> to vector<8x256xf32>
    %73 = arith.addf %70, %72 : vector<8x256xf32>
    %74 = arith.truncf %73 : vector<8x256xf32> to vector<8x256xbf16>
    %75 = vector.broadcast %43 : vector<8x1xf32> to vector<8x256xf32>
    %76 = arith.subf %1, %75 : vector<8x256xf32>
    %77 = vector.broadcast %63 : vector<8x1xf32> to vector<8x256xf32>
    %78 = arith.mulf %76, %77 : vector<8x256xf32>
    %c0_31 = arith.constant 0 : index
    %c0_32 = arith.constant 0 : index
    %79 = vector.load %arg8[%c0_31, %c0_32] : memref<1x256xf32, #tpu.memory_space<vmem>>, vector<1x256xf32>
    %80 = vector.broadcast %79 : vector<1x256xf32> to vector<8x256xf32>
    %81 = arith.mulf %78, %80 : vector<8x256xf32>
    %c0_33 = arith.constant 0 : index
    %c0_34 = arith.constant 0 : index
    %82 = vector.load %arg9[%c0_33, %c0_34] : memref<1x256xf32, #tpu.memory_space<vmem>>, vector<1x256xf32>
    %83 = vector.broadcast %82 : vector<1x256xf32> to vector<8x256xf32>
    %84 = arith.addf %81, %83 : vector<8x256xf32>
    %85 = arith.truncf %84 : vector<8x256xf32> to vector<8x256xbf16>
    %c0_35 = arith.constant 0 : index
    %c0_36 = arith.constant 0 : index
    %86 = vector.load %arg10[%c0_35, %c0_36] : memref<256x256xbf16, #tpu.memory_space<vmem>>, vector<256x256xbf16>
    %cst_37 = arith.constant dense<0.000000e+00> : vector<8x256xf32>
    %87 = tpu.matmul %74, %86, %cst_37 {dimension_numbers = #tpu.dot_dimension_numbers<[1], [0], [0], [1], [0, 0, 1, 1], [], []>} : vector<8x256xbf16>, vector<256x256xbf16>, vector<8x256xf32> -> vector<8x256xf32>
    %c0_38 = arith.constant 0 : index
    %c0_39 = arith.constant 0 : index
    %88 = vector.load %arg11[%c0_38, %c0_39] : memref<256x256xbf16, #tpu.memory_space<vmem>>, vector<256x256xbf16>
    %cst_40 = arith.constant dense<0.000000e+00> : vector<8x256xf32>
    %89 = tpu.matmul %85, %88, %cst_40 {dimension_numbers = #tpu.dot_dimension_numbers<[1], [0], [0], [1], [0, 0, 1, 1], [], []>} : vector<8x256xbf16>, vector<256x256xbf16>, vector<8x256xf32> -> vector<8x256xf32>
    %90 = arith.addf %87, %89 : vector<8x256xf32>
    %c0_41 = arith.constant 0 : index
    %c0_42 = arith.constant 0 : index
    %91 = vector.load %arg12[%c0_41, %c0_42] : memref<1x256xf32, #tpu.memory_space<vmem>>, vector<1x256xf32>
    %92 = vector.broadcast %91 : vector<1x256xf32> to vector<8x256xf32>
    %93 = arith.addf %90, %92 : vector<8x256xf32>
    %94 = arith.addf %32, %93 : vector<8x256xf32>
    %c0_43 = arith.constant 0 : index
    %c0_44 = arith.constant 0 : index
    %95 = vector.load %arg13[%c0_43, %c0_44] : memref<1x256xf32, #tpu.memory_space<vmem>>, vector<1x256xf32>
    %c0_45 = arith.constant 0 : index
    %c0_46 = arith.constant 0 : index
    %96 = vector.load %arg14[%c0_45, %c0_46] : memref<1x256xf32, #tpu.memory_space<vmem>>, vector<1x256xf32>
    %cst_47 = arith.constant dense<0.000000e+00> : vector<8xf32>
    %97 = vector.multi_reduction <add>, %94, %cst_47 [1] : vector<8x256xf32> to vector<8xf32>
    %98 = vector.shape_cast %97 : vector<8xf32> to vector<8x1xf32>
    %cst_48 = arith.constant 2.560000e+02 : f32
    %99 = vector.broadcast %cst_48 : f32 to vector<8x1xf32>
    %100 = arith.divf %98, %99 : vector<8x1xf32>
    %101 = vector.broadcast %100 : vector<8x1xf32> to vector<8x256xf32>
    %102 = arith.subf %94, %101 : vector<8x256xf32>
    %103 = arith.mulf %102, %102 : vector<8x256xf32>
    %cst_49 = arith.constant dense<0.000000e+00> : vector<8xf32>
    %104 = vector.multi_reduction <add>, %103, %cst_49 [1] : vector<8x256xf32> to vector<8xf32>
    %105 = vector.shape_cast %104 : vector<8xf32> to vector<8x1xf32>
    %cst_50 = arith.constant 2.560000e+02 : f32
    %106 = vector.broadcast %cst_50 : f32 to vector<8x1xf32>
    %107 = arith.divf %105, %106 : vector<8x1xf32>
    %108 = vector.broadcast %100 : vector<8x1xf32> to vector<8x256xf32>
    %109 = arith.subf %94, %108 : vector<8x256xf32>
    %cst_51 = arith.constant 9.99999974E-6 : f32
    %110 = vector.broadcast %cst_51 : f32 to vector<8x1xf32>
    %111 = arith.addf %107, %110 : vector<8x1xf32>
    %112 = math.rsqrt %111 : vector<8x1xf32>
    %113 = vector.broadcast %112 : vector<8x1xf32> to vector<8x256xf32>
    %114 = arith.mulf %109, %113 : vector<8x256xf32>
    %115 = vector.broadcast %95 : vector<1x256xf32> to vector<8x256xf32>
    %116 = arith.mulf %114, %115 : vector<8x256xf32>
    %117 = vector.broadcast %96 : vector<1x256xf32> to vector<8x256xf32>
    %118 = arith.addf %116, %117 : vector<8x256xf32>
    %119 = arith.truncf %118 : vector<8x256xf32> to vector<8x256xbf16>
    %c0_52 = arith.constant 0 : index
    %c0_53 = arith.constant 0 : index
    %120 = vector.load %arg15[%c0_52, %c0_53] : memref<256x1024xbf16, #tpu.memory_space<vmem>>, vector<256x1024xbf16>
    %cst_54 = arith.constant dense<0.000000e+00> : vector<8x1024xf32>
    %121 = tpu.matmul %119, %120, %cst_54 {dimension_numbers = #tpu.dot_dimension_numbers<[1], [0], [0], [1], [0, 0, 1, 1], [], []>} : vector<8x256xbf16>, vector<256x1024xbf16>, vector<8x1024xf32> -> vector<8x1024xf32>
    %c0_55 = arith.constant 0 : index
    %c0_56 = arith.constant 0 : index
    %122 = vector.load %arg16[%c0_55, %c0_56] : memref<1x1024xf32, #tpu.memory_space<vmem>>, vector<1x1024xf32>
    %123 = vector.broadcast %122 : vector<1x1024xf32> to vector<8x1024xf32>
    %124 = arith.addf %121, %123 : vector<8x1024xf32>
    %cst_57 = arith.constant 0.000000e+00 : f32
    %125 = vector.broadcast %cst_57 : f32 to vector<8x1024xf32>
    %126 = arith.maximumf %124, %125 : vector<8x1024xf32>
    %127 = arith.truncf %126 : vector<8x1024xf32> to vector<8x1024xbf16>
    %c0_58 = arith.constant 0 : index
    %c0_59 = arith.constant 0 : index
    %128 = vector.load %arg17[%c0_58, %c0_59] : memref<1024x256xbf16, #tpu.memory_space<vmem>>, vector<1024x256xbf16>
    %cst_60 = arith.constant dense<0.000000e+00> : vector<8x256xf32>
    %129 = tpu.matmul %127, %128, %cst_60 {dimension_numbers = #tpu.dot_dimension_numbers<[1], [0], [0], [1], [0, 0, 1, 1], [], []>} : vector<8x1024xbf16>, vector<1024x256xbf16>, vector<8x256xf32> -> vector<8x256xf32>
    %c0_61 = arith.constant 0 : index
    %c0_62 = arith.constant 0 : index
    %130 = vector.load %arg18[%c0_61, %c0_62] : memref<1x256xf32, #tpu.memory_space<vmem>>, vector<1x256xf32>
    %131 = vector.broadcast %130 : vector<1x256xf32> to vector<8x256xf32>
    %132 = arith.addf %129, %131 : vector<8x256xf32>
    %133 = arith.addf %94, %132 : vector<8x256xf32>
    %c0_63 = arith.constant 0 : index
    %c0_64 = arith.constant 0 : index
    %134 = vector.load %arg19[%c0_63, %c0_64] : memref<8x256xf32, #tpu.memory_space<vmem>>, vector<8x256xf32>
    tpu.vector_store %arg19[%c0_63, %c0_64], %133 {strides = array<i32>} : memref<8x256xf32, #tpu.memory_space<vmem>>, vector<8x256xf32>,
    return
  }
}

</mosaic_0001>

<bundles_post_ra>
// kernel: decoder_block_forward.1
= control target key start
LH: loop header
LB: loop body
LE: loop exit
PB: predicated region body
PF: predicated region fallthrough
CT: control target
= control target key end

     0   :  { %s4185_s0 = inlined_call_operand.vmem [shape: f32[8,256], index: 0, kind: input, shape index: {}]   ;;  %s4186_s1 = inlined_call_operand.vmem [shape: f32[8,256], index: 1, kind: input, shape index: {}]   ;;  %s4187_s2 = inlined_call_operand.vmem [shape: f32[1,256], index: 2, kind: input, shape index: {}]   ;;  %s4188_s3 = inlined_call_operand.vmem [shape: f32[1,256], index: 3, kind: input, shape index: {}]   ;;  %s4189_s4 = inlined_call_operand.hbm [shape: bf16[256,256], index: 4, kind: input, shape index: {}]   ;;  %s4190_s5 = inlined_call_operand.vmem [shape: f32[1,256], index: 5, kind: input, shape index: {}]   ;;  %s4191_s6 = inlined_call_operand.vmem [shape: f32[1,256], index: 6, kind: input, shape index: {}]   ;;  %s4192_s7 = inlined_call_operand.vmem [shape: f32[1,256], index: 7, kind: input, shape index: {}]   ;;  %s4193_s8 = inlined_call_operand.vmem [shape: f32[1,256], index: 8, kind: input, shape index: {}]   ;;  %s4194_s9 = inlined_call_operand.vmem [shape: f32[1,256], index: 9, kind: input, shape index: {}]   ;;  %s4195_s10 = inlined_call_operand.hbm [shape: bf16[256,256], index: 10, kind: input, shape index: {}]   ;;  %s4196_s11 = inlined_call_operand.hbm [shape: bf16[256,256], index: 11, kind: input, shape index: {}]   ;;  %s4197_s12 = inlined_call_operand.vmem [shape: f32[1,256], index: 12, kind: input, shape index: {}]   ;;  %s4198_s13 = inlined_call_operand.vmem [shape: f32[1,256], index: 13, kind: input, shape index: {}]   ;;  %s4199_s14 = inlined_call_operand.vmem [shape: f32[1,256], index: 14, kind: input, shape index: {}]   ;;  %s4200_s15 = inlined_call_operand.hbm [shape: bf16[256,1024], index: 15, kind: input, shape index: {}]   ;;  %s4201_s16 = inlined_call_operand.vmem [shape: f32[1,1024], index: 16, kind: input, shape index: {}]   ;;  %s4202_s17 = inlined_call_operand.hbm [shape: bf16[1024,256], index: 17, kind: input, shape index: {}]   ;;  %s4203_s18 = inlined_call_operand.vmem [shape: f32[1,256], index: 18, kind: input, shape index: {}]   ;;  %s4204_s19 = inlined_call_operand.vmem [shape: f32[8,256], index: 19, kind: output, shape index: {}]  }
   0x1   :  { %4211 = sst [smem:[#allocation13_spill]] %s4185_s0 }
   0x2   :  { %4212 = sst [smem:[#allocation14_spill]] %s4186_s1 }
   0x3   :  { %4213 = sst [smem:[#allocation15_spill]] %s4187_s2 }
   0x4   :  { %4214 = sst [smem:[#allocation16_spill]] %s4188_s3 }
   0x5   :  { %24 = vsyncpa [#allocation3], 0 }
   0x6   :  { %25 = vsyncpa [#allocation5], 0 }
   0x7   :  { %26 = vsyncpa [#allocation8], 0  ;;  %s3814_s0 = smov [#allocation4]   ;;  %s3815_s20 = smov [#allocation7]  }
   0x8   :  { %s62_s30 = sshll.u32 %s3814_s0, 4  ;;  %s92_s21 = sshll.u32 %s3815_s20, 4  ;;  %s63_s30 = int_to_ptr.vmem [resolvable:$true] %s62_s30  ;;  %s3923_s21 = int_to_ptr.vmem [resolvable:$true] %s92_s21 }
   0x9   :  { %s3698_s2 = scalar_lea.hbm %s4195_s10, 4096 }
   0xa   :  { %p3699_p0 = scmp.ne.s32.totalorder %s4195_s10, %s3698_s2  ;;  %p3702_p1 = scmp.lt.u32.totalorder %s3698_s2, %s4195_s10 }
   0xc   :  { %p3704_p2 = pnand %p3702_p1, %p3699_p0 }
   0xe   :  { %3707 = shalt.err (!%p3704_p2)
}
   0xf   :  { %s3708_s26 = scalar_lea.vmem %s63_s30, 4096  ;;  %p3713_p4 = scmp.lt.s32.totalorder %s63_s30, %s63_s30 }
  0x10   :  { %p3709_p3 = scmp.ne.s32.totalorder %s63_s30, %s3708_s26  ;;  %p3714_p5 = scmp.lt.s32.totalorder %s3708_s26, %s3708_s26 }
  0x12   :  { %p3715_p6 = por %p3714_p5, %p3713_p4 }
  0x14   :  { %p3716_p7 = pnand %p3715_p6, %p3709_p3 }
  0x16   :  { %3719 = shalt.err (!%p3716_p7)
}
  0x17   :  { %s4207_s27 = smov 128   ;;  %s4209_s28 = smov 8  }
  0x18   :  { %68 = dma.hbm_to_vmem [thread:$0]  %s4195_s10, 4096, %s63_s30, [#allocation5], %s4207_s27, %s4207_s27, %s4209_s28  }
  0x19   :  { %s3720_s22 = scalar_lea.hbm %s4200_s15, 16384 }
  0x1a   :  { %p3721_p8 = scmp.ne.s32.totalorder %s4200_s15, %s3720_s22  ;;  %p3724_p9 = scmp.lt.u32.totalorder %s3720_s22, %s4200_s15 }
  0x1c   :  { %p3726_p10 = pnand %p3724_p9, %p3721_p8 }
  0x1e   :  { %3729 = shalt.err (!%p3726_p10)
}
  0x1f   :  { %s3730_s3 = scalar_lea.vmem %s3923_s21, 16384  ;;  %p3735_p12 = scmp.lt.s32.totalorder %s3923_s21, %s3923_s21 }
  0x20   :  { %p3731_p11 = scmp.ne.s32.totalorder %s3923_s21, %s3730_s3  ;;  %p3736_p13 = scmp.lt.s32.totalorder %s3730_s3, %s3730_s3 }
  0x22   :  { %p3737_p0 = por %p3736_p13, %p3735_p12 }
  0x24   :  { %p3738_p1 = pnand %p3737_p0, %p3731_p11 }
  0x26   :  { %3741 = shalt.err (!%p3738_p1)
}
  0x27   :  { %s3818_s10 = smov 512   ;;  %s3819_s30 = smov 32  }
  0x28   :  { %98 = dma.hbm_to_vmem [thread:$0]  %s4200_s15, 16384, %s3923_s21, [#allocation8], %s3818_s10, %s3818_s10, %s3819_s30  }
  0x29   :  { %s3820_s0 = smov [#allocation2]   ;;  %s3821_s1 = smov [#allocation6]  }
  0x2a   :  { %s40_s20 = sshll.u32 %s3820_s0, 4  ;;  %s74_s22 = sshll.u32 %s3821_s1, 4  ;;  %s41_s20 = int_to_ptr.vmem [resolvable:$true] %s40_s20  ;;  %s3957_s22 = int_to_ptr.vmem [resolvable:$true] %s74_s22 }
  0x2b   :  { %s3742_s24 = scalar_lea.hbm %s4189_s4, 4096 }
  0x2c   :  { %p3743_p2 = scmp.ne.s32.totalorder %s4189_s4, %s3742_s24  ;;  %p3746_p3 = scmp.lt.u32.totalorder %s3742_s24, %s4189_s4 }
  0x2e   :  { %p3748_p4 = pnand %p3746_p3, %p3743_p2 }
  0x30   :  { %3751 = shalt.err (!%p3748_p4)
}
  0x31   :  { %s3752_s15 = scalar_lea.vmem %s41_s20, 4096  ;;  %p3757_p6 = scmp.lt.s32.totalorder %s41_s20, %s41_s20 }
  0x32   :  { %p3753_p5 = scmp.ne.s32.totalorder %s41_s20, %s3752_s15  ;;  %p3758_p7 = scmp.lt.s32.totalorder %s3752_s15, %s3752_s15 }
  0x34   :  { %p3759_p8 = por %p3758_p7, %p3757_p6 }
  0x36   :  { %p3760_p9 = pnand %p3759_p8, %p3753_p5 }
  0x38   :  { %3763 = shalt.err (!%p3760_p9)
}
  0x39   :  { %s4215_s21 = smov 8   ;;  %s4216_s10 = smov 128  }
  0x3a   :  { %46 = dma.hbm_to_vmem [thread:$0]  %s4189_s4, 4096, %s41_s20, [#allocation3], %s4216_s10, %s4216_s10, %s4215_s21  }
  0x3b   :  { %s3764_s27 = scalar_lea.hbm %s4196_s11, 4096 }
  0x3c   :  { %p3765_p10 = scmp.ne.s32.totalorder %s4196_s11, %s3764_s27  ;;  %p3768_p11 = scmp.lt.u32.totalorder %s3764_s27, %s4196_s11 }
  0x3e   :  { %p3770_p12 = pnand %p3768_p11, %p3765_p10 }
  0x40   :  { %3773 = shalt.err (!%p3770_p12)
}
  0x41   :  { %s3774_s24 = scalar_lea.vmem %s3957_s22, 4096  ;;  %p3779_p0 = scmp.lt.s32.totalorder %s3957_s22, %s3957_s22 }
  0x42   :  { %p3775_p13 = scmp.ne.s32.totalorder %s3957_s22, %s3774_s24  ;;  %p3780_p1 = scmp.lt.s32.totalorder %s3774_s24, %s3774_s24 }
  0x44   :  { %p3781_p2 = por %p3780_p1, %p3779_p0 }
  0x46   :  { %p3782_p3 = pnand %p3781_p2, %p3775_p13 }
  0x48   :  { %3785 = shalt.err (!%p3782_p3)
}
  0x49   :  { %80 = dma.hbm_to_vmem [thread:$0]  %s4196_s11, 4096, %s3957_s22, [#allocation5], %s4216_s10, %s4216_s10, %s4215_s21  }
  0x4a   :  { %s3822_s25 = smov [#allocation9]   ;;  %s3786_s26 = scalar_lea.hbm %s4202_s17, 16384 }
  0x4b   :  { %s106_s3 = sshll.u32 %s3822_s25, 4  ;;  %p3787_p4 = scmp.ne.s32.totalorder %s4202_s17, %s3786_s26  ;;  %s107_s3 = int_to_ptr.vmem [resolvable:$true] %s106_s3 }
  0x4c   :  { %p3790_p5 = scmp.lt.u32.totalorder %s3786_s26, %s4202_s17 }
  0x4e   :  { %p3792_p6 = pnand %p3790_p5, %p3787_p4 }
  0x50   :  { %3795 = shalt.err (!%p3792_p6)
}
  0x51   :  { %s3796_s1 = scalar_lea.vmem %s107_s3, 16384  ;;  %p3801_p8 = scmp.lt.s32.totalorder %s107_s3, %s107_s3 }
  0x52   :  { %p3797_p7 = scmp.ne.s32.totalorder %s107_s3, %s3796_s1  ;;  %p3802_p9 = scmp.lt.s32.totalorder %s3796_s1, %s3796_s1 }
  0x54   :  { %p3803_p10 = por %p3802_p9, %p3801_p8 }
  0x56   :  { %p3804_p11 = pnand %p3803_p10, %p3797_p7 }
  0x58   :  { %3807 = shalt.err (!%p3804_p11)
}
  0x59   :  { %112 = dma.hbm_to_vmem [thread:$0]  %s4202_s17, 16384, %s107_s3, [#allocation8], %s4216_s10, %s4216_s10, %s4215_s21  }
  0x5a   :  { %3808 = dma.done.wait [#allocation3], 4096  }
  0x5b   :  { %3809 = vsyncadd [#allocation3], 4294963200 }
  0x5c   :  { %3810 = dma.done.wait [#allocation5], 8192  }
  0x5d   :  { %3811 = vsyncadd [#allocation5], 4294959104 }
  0x5e   :  { %3812 = dma.done.wait [#allocation8], 32768  }
  0x5f   :  { %3813 = vsyncadd [#allocation8], 4294934528  ;;  %s4217_s24 = sld [smem:[#allocation13_spill]]  ;;  %v3356_v3 = vld [vmem:[#allocation2 + $0x4] ss:$8 sps:$4 sm:$0xff]   ;;  %v154_v44 = vlaneseq  ;;  %s4218_s10 = sld [smem:[#allocation15_spill]] }
  0x60   :  { %v3358_v4 = vld [vmem:[#allocation2] ss:$8 sps:$4 sm:$0xff]   ;;  %v3359_v5 = vld [vmem:[#allocation2 + $0x14] ss:$8 sps:$4 sm:$0xff]   ;;  %385 = vmatprep.subr.bf16.mxu0 %v3356_v3  ;;  %v3361_v6 = vld [vmem:[#allocation2 + $0x10] ss:$8 sps:$4 sm:$0xff]  }
  0x61   :  { %386 = vmatpush1.bf16.msra.mxu0 %v3358_v4  ;;  %v3362_v7 = vld [vmem:[#allocation2 + $0x24] ss:$8 sps:$4 sm:$0xff]   ;;  %v3364_v8 = vld [vmem:[#allocation2 + $0x20] ss:$8 sps:$4 sm:$0xff]   ;;  %v3365_v9 = vld [vmem:[#allocation2 + $0x34] ss:$8 sps:$4 sm:$0xff]  }
  0x62   :  { %387 = vmatprep.subr.bf16.mxu0 %v3359_v5  ;;  %v3367_v10 = vld [vmem:[#allocation2 + $0x30] ss:$8 sps:$4 sm:$0xff]   ;;  %v3368_v11 = vld [vmem:[#allocation2 + $0x44] ss:$8 sps:$4 sm:$0xff]   ;;  %v3370_v12 = vld [vmem:[#allocation2 + $0x40] ss:$8 sps:$4 sm:$0xff]  }
  0x63   :  { %v3371_v13 = vld [vmem:[#allocation2 + $0x54] ss:$8 sps:$4 sm:$0xff]   ;;  %v3373_v14 = vld [vmem:[#allocation2 + $0x50] ss:$8 sps:$4 sm:$0xff]   ;;  %v3374_v15 = vld [vmem:[#allocation2 + $0x64] ss:$8 sps:$4 sm:$0xff]  }
  0x64   :  { %v3376_v16 = vld [vmem:[#allocation2 + $0x60] ss:$8 sps:$4 sm:$0xff]   ;;  %v3377_v17 = vld [vmem:[#allocation2 + $0x74] ss:$8 sps:$4 sm:$0xff]   ;;  %v3379_v18 = vld [vmem:[#allocation2 + $0x70] ss:$8 sps:$4 sm:$0xff]  }
  0x65   :  { %v4012_v0 = vld [vmem:[%s4217_s24] sm:$0xff]  ;;  %v4017_v1 = vld [vmem:[%s4217_s24 + $0x8] sm:$0xff]  ;;  %388 = vmatpush1.bf16.msra.mxu0 %v3361_v6  ;;  %v3383_v21 = vld [vmem:[#allocation2 + $0x94] ss:$8 sps:$4 sm:$0xff]   ;;  %v4023_v46 = vshrl.u32 %v154_v44, 7  ;;  %s4219_s15 = sld [smem:[#allocation16_spill]] }
  0x66   :  { %v136_v2 = vadd.f32 %v4017_v1, %v4012_v0  ;;  %389 = vmatprep.subr.bf16.mxu0 %v3362_v7  ;;  %v3380_v19 = vld [vmem:[#allocation2 + $0x84] ss:$8 sps:$4 sm:$0xff]   ;;  %v3382_v20 = vld [vmem:[#allocation2 + $0x80] ss:$8 sps:$4 sm:$0xff]   ;;  %v3385_v22 = vld [vmem:[#allocation2 + $0x90] ss:$8 sps:$4 sm:$0xff]  }
  0x67   :  { %v3386_v30 = vld [vmem:[#allocation2 + $0xa4] ss:$8 sps:$4 sm:$0xff]   ;;  %v3388_v31 = vld [vmem:[#allocation2 + $0xa0] ss:$8 sps:$4 sm:$0xff]   ;;  %v3389_v32 = vld [vmem:[#allocation2 + $0xb4] ss:$8 sps:$4 sm:$0xff]  }
  0x68   :  { %137 = vadd.xlane.f32.xlu0 %v136_v2  ;;  %v3391_v33 = vld [vmem:[#allocation2 + $0xb0] ss:$8 sps:$4 sm:$0xff]   ;;  %v3392_v34 = vld [vmem:[#allocation2 + $0xc4] ss:$8 sps:$4 sm:$0xff]   ;;  %v3394_v35 = vld [vmem:[#allocation2 + $0xc0] ss:$8 sps:$4 sm:$0xff]  }
  0x69   :  { %390 = vmatpush1.bf16.msra.mxu0 %v3364_v8  ;;  %v3395_v36 = vld [vmem:[#allocation2 + $0xd4] ss:$8 sps:$4 sm:$0xff]   ;;  %v3397_v37 = vld [vmem:[#allocation2 + $0xd0] ss:$8 sps:$4 sm:$0xff]   ;;  %v3398_v38 = vld [vmem:[#allocation2 + $0xe4] ss:$8 sps:$4 sm:$0xff]  }
  0x6a   :  { %391 = vmatprep.subr.bf16.mxu0 %v3365_v9  ;;  %v3400_v39 = vld [vmem:[#allocation2 + $0xe0] ss:$8 sps:$4 sm:$0xff]   ;;  %v3401_v40 = vld [vmem:[#allocation2 + $0xf4] ss:$8 sps:$4 sm:$0xff]   ;;  %v3403_v41 = vld [vmem:[#allocation2 + $0xf0] ss:$8 sps:$4 sm:$0xff]  }
  0x6b   :  { %v4026_v47 = vsub.s32 0, %v4023_v46  ;;  %v4029_v48 = vsub.s32 1, %v4023_v46  ;;  %v134_v49 = vld [vmem:[%s4218_s10] sm:$0x3]  ;;  %s4220_s27 = sld [smem:[#allocation14_spill]] }
  0x6c   :  { %v135_v50 = vld [vmem:[%s4219_s15] sm:$0x3]  ;;  %v3450_v44 = vld [vmem:[#allocation4 + $0x74] ss:$8 sps:$4 sm:$0xff]  }
  0x6d   :  { %392 = vmatpush1.bf16.msra.mxu0 %v3367_v10  ;;  %v157_v51 = vrot.slane %v134_v49, %v4026_v47  ;;  %v161_v52 = vrot.slane %v134_v49, %v4029_v48  ;;  %v170_v55 = vrot.slane %v135_v50, %v4026_v47  ;;  %v174_v56 = vrot.slane %v135_v50, %v4029_v48  ;;  %v213_v2 = vld [vmem:[%s4190_s5] sm:$0x3]  ;;  %v3451_v49 = vld [vmem:[#allocation6 + $0x70] ss:$8 sps:$4 sm:$0xff]   ;;  %v3452_v50 = vld [vmem:[#allocation6 + $0x84] ss:$8 sps:$4 sm:$0xff]  }
  0x6e   :  { %393 = vmatprep.subr.bf16.mxu0 %v3368_v11  ;;  %v218_v3 = vrot.slane %v213_v2, %v4026_v47  ;;  %v222_v4 = vrot.slane %v213_v2, %v4029_v48 }
  0x71   :  { %394 = vmatpush1.bf16.msra.mxu0 %v3370_v12 }
  0x72   :  { %395 = vmatprep.subr.bf16.mxu0 %v3371_v13  ;;  %v4055_v13 = vld [vmem:[%s4220_s27] sm:$0xff] }
  0x75   :  { %396 = vmatpush1.bf16.msra.mxu0 %v3373_v14  ;;  %v4060_v14 = vld [vmem:[%s4220_s27 + $0x8] sm:$0xff] }
  0x76   :  { %397 = vmatprep.subr.bf16.mxu0 %v3374_v15 }
  0x79   :  { %398 = vmatpush1.bf16.msra.mxu0 %v3376_v16  ;;  %v3406_v16 = vld [vmem:[#allocation4] ss:$8 sps:$4 sm:$0xff]  }
  0x7a   :  { %399 = vmatprep.subr.bf16.mxu0 %v3377_v17  ;;  %v3408_v17 = vld [vmem:[#allocation4 + $0x4] ss:$8 sps:$4 sm:$0xff]  }
  0x7d   :  { %400 = vmatpush1.bf16.msra.mxu0 %v3379_v18  ;;  %v3409_v18 = vld [vmem:[#allocation6] ss:$8 sps:$4 sm:$0xff]  }
  0x7e   :  { %401 = vmatprep.subr.bf16.mxu0 %v3380_v19  ;;  %v3410_v19 = vld [vmem:[#allocation6 + $0x14] ss:$8 sps:$4 sm:$0xff]  }
  0x81   :  { %402 = vmatpush1.bf16.msra.mxu0 %v3382_v20  ;;  %v3414_v20 = vld [vmem:[#allocation4 + $0x14] ss:$8 sps:$4 sm:$0xff]  }
  0x82   :  { %403 = vmatprep.subr.bf16.mxu0 %v3383_v21  ;;  %v3412_v21 = vld [vmem:[#allocation4 + $0x10] ss:$8 sps:$4 sm:$0xff]  }
  0x85   :  { %404 = vmatpush1.bf16.msra.mxu0 %v3385_v22  ;;  %v3415_v22 = vld [vmem:[#allocation6 + $0x10] ss:$8 sps:$4 sm:$0xff]  }
  0x86   :  { %405 = vmatprep.subr.bf16.mxu0 %v3386_v30  ;;  %v3427_v30 = vld [vmem:[#allocation6 + $0x30] ss:$8 sps:$4 sm:$0xff]  }
  0x89   :  { %406 = vmatpush1.bf16.msra.mxu0 %v3388_v31  ;;  %v3428_v31 = vld [vmem:[#allocation6 + $0x44] ss:$8 sps:$4 sm:$0xff]  }
  0x8a   :  { %407 = vmatprep.subr.bf16.mxu0 %v3389_v32  ;;  %v3432_v32 = vld [vmem:[#allocation4 + $0x44] ss:$8 sps:$4 sm:$0xff]  }
  0x8d   :  { %408 = vmatpush1.bf16.msra.mxu0 %v3391_v33  ;;  %v3430_v33 = vld [vmem:[#allocation4 + $0x40] ss:$8 sps:$4 sm:$0xff]  }
  0x8e   :  { %409 = vmatprep.subr.bf16.mxu0 %v3392_v34  ;;  %v3433_v34 = vld [vmem:[#allocation6 + $0x40] ss:$8 sps:$4 sm:$0xff]  }
  0x91   :  { %410 = vmatpush1.bf16.msra.mxu0 %v3394_v35  ;;  %v3434_v35 = vld [vmem:[#allocation6 + $0x54] ss:$8 sps:$4 sm:$0xff]  }
  0x92   :  { %411 = vmatprep.subr.bf16.mxu0 %v3395_v36  ;;  %v3438_v36 = vld [vmem:[#allocation4 + $0x54] ss:$8 sps:$4 sm:$0xff]  }
  0x95   :  { %412 = vmatpush1.bf16.msra.mxu0 %v3397_v37  ;;  %v3436_v37 = vld [vmem:[#allocation4 + $0x50] ss:$8 sps:$4 sm:$0xff]  }
  0x96   :  { %413 = vmatprep.subr.bf16.mxu0 %v3398_v38  ;;  %v3439_v38 = vld [vmem:[#allocation6 + $0x50] ss:$8 sps:$4 sm:$0xff]  }
  0x99   :  { %414 = vmatpush1.bf16.msra.mxu0 %v3400_v39  ;;  %v3440_v39 = vld [vmem:[#allocation6 + $0x64] ss:$8 sps:$4 sm:$0xff]  }
  0x9a   :  { %415 = vmatprep.subr.bf16.mxu0 %v3401_v40  ;;  %v3444_v40 = vld [vmem:[#allocation4 + $0x64] ss:$8 sps:$4 sm:$0xff]  }
  0x9d   :  { %416 = vmatpush1.bf16.msra.mxu0 %v3403_v41  ;;  %v3442_v41 = vld [vmem:[#allocation4 + $0x60] ss:$8 sps:$4 sm:$0xff]  }
  0x9e   :  { %947 = vmatprep.subr.bf16.mxu0 %v3408_v17  ;;  %v3474_v17 = vld [vmem:[#allocation4 + $0xb4] ss:$8 sps:$4 sm:$0xff]  }
  0xf5   :  { %v138_v23 = vpop.xlane.xlu0 %137 }
  0xf6   :  { %v140_v24 = vmul.f32 0.00390625, %v138_v23  ;;  %v3416_v23 = vld [vmem:[#allocation6 + $0x24] ss:$8 sps:$4 sm:$0xff]  }
  0xf8   :  { %v141_v25 = vsub.f32 %v4012_v0, %v140_v24  ;;  %v142_v26 = vsub.f32 %v4017_v1, %v140_v24  ;;  %v3420_v24 = vld [vmem:[#allocation4 + $0x24] ss:$8 sps:$4 sm:$0xff]  }
  0xfa   :  { %v143_v27 = vmul.f32 %v141_v25, %v141_v25  ;;  %v144_v28 = vmul.f32 %v142_v26, %v142_v26 }
  0xfc   :  { %v145_v29 = vadd.f32 %v144_v28, %v143_v27  ;;  %v3422_v27 = vld [vmem:[#allocation6 + $0x34] ss:$8 sps:$4 sm:$0xff]  }
  0xfd   :  { %v3426_v28 = vld [vmem:[#allocation4 + $0x34] ss:$8 sps:$4 sm:$0xff]  }
  0xfe   :  { %146 = vadd.xlane.f32.xlu0 %v145_v29  ;;  %v3424_v29 = vld [vmem:[#allocation4 + $0x30] ss:$8 sps:$4 sm:$0xff]  }
 0x18b   :  { %v147_v42 = vpop.xlane.xlu0 %146 }
 0x18c   :  { %v148_v43 = vmul.f32 0.00390625, %v147_v42  ;;  %v3445_v42 = vld [vmem:[#allocation6 + $0x60] ss:$8 sps:$4 sm:$0xff]  }
 0x18e   :  { %v149_v45 = vadd.f32 1e-05, %v148_v43  ;;  %v3446_v43 = vld [vmem:[#allocation6 + $0x74] ss:$8 sps:$4 sm:$0xff]  }
 0x190   :  { %3692 = vrsqrt.f32 %v149_v45  ;;  %v3448_v45 = vld [vmem:[#allocation4 + $0x70] ss:$8 sps:$4 sm:$0xff]  }
 0x19a   :  { %v3693_v53 = vpop.eup %3692 }
 0x19b   :  { %v152_v54 = vmul.f32 %v3693_v53, %v142_v26  ;;  %v151_v57 = vmul.f32 %v3693_v53, %v141_v25  ;;  %v3418_v25 = vld [vmem:[#allocation4 + $0x20] ss:$8 sps:$4 sm:$0xff]  }
 0x19c   :  { %v3421_v26 = vld [vmem:[#allocation6 + $0x20] ss:$8 sps:$4 sm:$0xff]  }
 0x19d   :  { %v165_v58 = vmul.f32 %v161_v52, %v152_v54  ;;  %v164_v59 = vmul.f32 %v157_v51, %v151_v57  ;;  %v3456_v51 = vld [vmem:[#allocation4 + $0x84] ss:$8 sps:$4 sm:$0xff]   ;;  %v3454_v52 = vld [vmem:[#allocation4 + $0x80] ss:$8 sps:$4 sm:$0xff]  }
 0x19e   :  { %v3457_v53 = vld [vmem:[#allocation6 + $0x80] ss:$8 sps:$4 sm:$0xff]  }
 0x19f   :  { %v178_v60 = vadd.f32 %v174_v56, %v165_v58  ;;  %v177_v61 = vadd.f32 %v170_v55, %v164_v59 }
 0x1a1   :  { %v180_v62 = vpack.c.bf16 %v178_v60, %v178_v60  ;;  %v179_v63 = vpack.c.bf16 %v177_v61, %v177_v61 }
 0x1a3   :  { %417 = vmatprep.mubr.bf16.mxu0 %v180_v62 }
 0x1a4   :  { %418 = vmatmul.mubr.bf16.vlgmr.msra.gmra.mrb[0].mxu0 %v179_v63 }
 0x1a5   :  { %948 = vmatpush1.bf16.msra.mxu0 %v3406_v16  ;;  %v3470_v16 = vld [vmem:[#allocation6 + $0xb4] ss:$8 sps:$4 sm:$0xff]  }
 0x1a6   :  { %949 = vmatprep.subr.bf16.mxu0 %v3414_v20  ;;  %v3476_v20 = vld [vmem:[#allocation6 + $0xc4] ss:$8 sps:$4 sm:$0xff]  }
 0x1a9   :  { %950 = vmatpush1.bf16.msra.mxu0 %v3412_v21  ;;  %v3480_v21 = vld [vmem:[#allocation4 + $0xc4] ss:$8 sps:$4 sm:$0xff]  }
 0x1aa   :  { %951 = vmatprep.subr.bf16.mxu0 %v3420_v24  ;;  %v3482_v24 = vld [vmem:[#allocation6 + $0xd4] ss:$8 sps:$4 sm:$0xff]  }
 0x1ad   :  { %952 = vmatpush1.bf16.msra.mxu0 %v3418_v25  ;;  %v3486_v25 = vld [vmem:[#allocation4 + $0xd4] ss:$8 sps:$4 sm:$0xff]  }
 0x1ae   :  { %953 = vmatprep.subr.bf16.mxu0 %v3426_v28  ;;  %v3488_v28 = vld [vmem:[#allocation6 + $0xe4] ss:$8 sps:$4 sm:$0xff]  }
 0x1b1   :  { %954 = vmatpush1.bf16.msra.mxu0 %v3424_v29  ;;  %v3492_v29 = vld [vmem:[#allocation4 + $0xe4] ss:$8 sps:$4 sm:$0xff]  }
 0x1b2   :  { %955 = vmatprep.subr.bf16.mxu0 %v3432_v32  ;;  %v3494_v32 = vld [vmem:[#allocation6 + $0xf4] ss:$8 sps:$4 sm:$0xff]  }
 0x1b5   :  { %956 = vmatpush1.bf16.msra.mxu0 %v3430_v33  ;;  %v3498_v33 = vld [vmem:[#allocation4 + $0xf4] ss:$8 sps:$4 sm:$0xff]  }
 0x1b6   :  { %957 = vmatprep.subr.bf16.mxu0 %v3438_v36 }
 0x1b9   :  { %958 = vmatpush1.bf16.msra.mxu0 %v3436_v37 }
 0x1ba   :  { %959 = vmatprep.subr.bf16.mxu0 %v3444_v40 }
 0x1bd   :  { %960 = vmatpush1.bf16.msra.mxu0 %v3442_v41 }
 0x1be   :  { %961 = vmatprep.subr.bf16.mxu0 %v3450_v44  ;;  %v460_v44 = vld [vmem:[%s4191_s6] sm:$0x3] }
 0x1c1   :  { %962 = vmatpush1.bf16.msra.mxu0 %v3448_v45  ;;  %v506_v45 = vld [vmem:[%s4194_s9] sm:$0x3] }
 0x1c2   :  { %963 = vmatprep.subr.bf16.mxu0 %v3456_v51 }
 0x1c5   :  { %964 = vmatpush1.bf16.msra.mxu0 %v3454_v52  ;;  %v465_v52 = vrot.slane %v460_v44, %v4026_v47 }
 0x277   :  { %v419_v5 = vpop.f32.mrb[0].mxu0 }
 0x278   :  { %v420_v6 = vadd.f32 %v419_v5, %v218_v3  ;;  %v421_v7 = vpop.f32.mrb[1].mxu0 }
 0x279   :  { %v422_v8 = vadd.f32 %v421_v7, %v222_v4  ;;  %v423_v9 = vpop.f32.mrb[2].mxu0 }
 0x27a   :  { %v4047_v10 = vadd.f32 %v420_v6, %v4012_v0  ;;  %v424_v11 = vpop.f32.mrb[3].mxu0  ;;  %v432_v0 = vadd.f32 %v4060_v14, %v4055_v13  ;;  %v3462_v9 = vld [vmem:[#allocation4 + $0x94] ss:$8 sps:$4 sm:$0xff]  }
 0x27b   :  { %v4050_v12 = vadd.f32 %v422_v8, %v4017_v1  ;;  %v3404_v1 = vld [vmem:[#allocation6 + $0x4] ss:$8 sps:$4 sm:$0xff]   ;;  %v3458_v8 = vld [vmem:[#allocation6 + $0x94] ss:$8 sps:$4 sm:$0xff]   ;;  %v3460_v11 = vld [vmem:[#allocation4 + $0x90] ss:$8 sps:$4 sm:$0xff]   ;;  %965 = vmatprep.subr.bf16.mxu0 %v3462_v9 }
 0x27c   :  { %746 = vmatprep.subr.bf16.mxu1 %v3404_v1  ;;  %966 = vmatpush1.bf16.msra.mxu0 %v3460_v11  ;;  %v3469_v1 = vld [vmem:[#allocation6 + $0xa0] ss:$8 sps:$4 sm:$0xff]  }
 0x27d   :  { %v428_v15 = vadd.f32 %v4050_v12, %v4047_v10  ;;  %747 = vmatpush1.bf16.msra.mxu1 %v3409_v18  ;;  %v3472_v18 = vld [vmem:[#allocation4 + $0xb0] ss:$8 sps:$4 sm:$0xff]  }
 0x27e   :  { %748 = vmatprep.subr.bf16.mxu1 %v3410_v19  ;;  %v3475_v19 = vld [vmem:[#allocation6 + $0xb0] ss:$8 sps:$4 sm:$0xff]  }
 0x27f   :  { %429 = vadd.xlane.f32.xlu1 %v428_v15  ;;  %v3468_v15 = vld [vmem:[#allocation4 + $0xa4] ss:$8 sps:$4 sm:$0xff]  }
 0x280   :  { %967 = vmatprep.subr.bf16.mxu0 %v3468_v15 }
 0x281   :  { %749 = vmatpush1.bf16.msra.mxu1 %v3415_v22  ;;  %v3478_v22 = vld [vmem:[#allocation4 + $0xc0] ss:$8 sps:$4 sm:$0xff]  }
 0x282   :  { %750 = vmatprep.subr.bf16.mxu1 %v3416_v23  ;;  %v3481_v23 = vld [vmem:[#allocation6 + $0xc0] ss:$8 sps:$4 sm:$0xff]  }
 0x283   :  { %433 = vadd.xlane.f32.xlu1 %v432_v0  ;;  %v3466_v0 = vld [vmem:[#allocation4 + $0xa0] ss:$8 sps:$4 sm:$0xff]  }
 0x284   :  { %968 = vmatpush1.bf16.msra.mxu0 %v3466_v0 }
 0x285   :  { %751 = vmatpush1.bf16.msra.mxu1 %v3421_v26  ;;  %969 = vmatprep.subr.bf16.mxu0 %v3474_v17  ;;  %v3484_v26 = vld [vmem:[#allocation4 + $0xd0] ss:$8 sps:$4 sm:$0xff]  }
 0x286   :  { %752 = vmatprep.subr.bf16.mxu1 %v3422_v27  ;;  %v3487_v27 = vld [vmem:[#allocation6 + $0xd0] ss:$8 sps:$4 sm:$0xff]  }
 0x288   :  { %970 = vmatpush1.bf16.msra.mxu0 %v3472_v18 }
 0x289   :  { %753 = vmatpush1.bf16.msra.mxu1 %v3427_v30  ;;  %971 = vmatprep.subr.bf16.mxu0 %v3480_v21  ;;  %v3490_v30 = vld [vmem:[#allocation4 + $0xe0] ss:$8 sps:$4 sm:$0xff]  }
 0x28a   :  { %754 = vmatprep.subr.bf16.mxu1 %v3428_v31  ;;  %v3493_v31 = vld [vmem:[#allocation6 + $0xe0] ss:$8 sps:$4 sm:$0xff]  }
 0x28c   :  { %972 = vmatpush1.bf16.msra.mxu0 %v3478_v22 }
 0x28d   :  { %755 = vmatpush1.bf16.msra.mxu1 %v3433_v34  ;;  %973 = vmatprep.subr.bf16.mxu0 %v3486_v25  ;;  %v3496_v34 = vld [vmem:[#allocation4 + $0xf0] ss:$8 sps:$4 sm:$0xff]  }
 0x28e   :  { %756 = vmatprep.subr.bf16.mxu1 %v3434_v35  ;;  %v3499_v35 = vld [vmem:[#allocation6 + $0xf0] ss:$8 sps:$4 sm:$0xff]  }
 0x290   :  { %974 = vmatpush1.bf16.msra.mxu0 %v3484_v26 }
 0x291   :  { %757 = vmatpush1.bf16.msra.mxu1 %v3439_v38  ;;  %975 = vmatprep.subr.bf16.mxu0 %v3492_v29 }
 0x292   :  { %758 = vmatprep.subr.bf16.mxu1 %v3440_v39 }
 0x294   :  { %976 = vmatpush1.bf16.msra.mxu0 %v3490_v30 }
 0x295   :  { %759 = vmatpush1.bf16.msra.mxu1 %v3445_v42  ;;  %977 = vmatprep.subr.bf16.mxu0 %v3498_v33  ;;  %v1051_v33 = vld [vmem:[#allocation7 + $0x8] sm:$0xff] }
 0x296   :  { %760 = vmatprep.subr.bf16.mxu1 %v3446_v43  ;;  %v492_v43 = vld [vmem:[%s4193_s8] sm:$0x3] }
 0x297   :  { %v501_v51 = vrot.slane %v492_v43, %v4029_v48 }
 0x298   :  { %978 = vmatpush1.bf16.msra.mxu0 %v3496_v34 }
 0x299   :  { %761 = vmatpush1.bf16.msra.mxu1 %v3451_v49  ;;  %v474_v49 = vld [vmem:[%s4192_s7] sm:$0x3] }
 0x29a   :  { %762 = vmatprep.subr.bf16.mxu1 %v3452_v50  ;;  %v497_v50 = vrot.slane %v492_v43, %v4026_v47  ;;  %v1066_v43 = vld [vmem:[#allocation7 + $0x80] sm:$0xff] }
 0x29d   :  { %763 = vmatpush1.bf16.msra.mxu1 %v3457_v53  ;;  %v469_v53 = vrot.slane %v460_v44, %v4029_v48  ;;  %v1070_v44 = vld [vmem:[#allocation7 + $0xa0] sm:$0xff] }
 0x29e   :  { %764 = vmatprep.subr.bf16.mxu1 %v3458_v8 }
 0x30c   :  { %v430_v54 = vpop.xlane.xlu1 %429 }
 0x30d   :  { %v431_v56 = vmul.f32 0.00390625, %v430_v54 }
 0x310   :  { %v434_v55 = vpop.xlane.xlu1 %433 }
 0x311   :  { %v435_v57 = vmul.f32 0.00390625, %v434_v55  ;;  %v511_v55 = vrot.slane %v506_v45, %v4026_v47 }
 0x313   :  { %v436_v58 = vadd.f32 %v435_v57, %v431_v56  ;;  %v515_v56 = vrot.slane %v506_v45, %v4029_v48  ;;  %v479_v57 = vrot.slane %v474_v49, %v4026_v47  ;;  %v1067_v45 = vld [vmem:[#allocation7 + $0x88] sm:$0xff] }
 0x315   :  { %v437_v59 = vmul.f32 0.5, %v436_v58  ;;  %v483_v58 = vrot.slane %v474_v49, %v4029_v48  ;;  %v1071_v49 = vld [vmem:[#allocation7 + $0xa8] sm:$0xff] }
 0x317   :  { %v4067_v60 = vsub.f32 %v4055_v13, %v437_v59  ;;  %v4070_v61 = vsub.f32 %v4060_v14, %v437_v59  ;;  %v4073_v62 = vsub.f32 %v4047_v10, %v437_v59  ;;  %v4076_v63 = vsub.f32 %v4050_v12, %v437_v59  ;;  %v3463_v13 = vld [vmem:[#allocation6 + $0x90] ss:$8 sps:$4 sm:$0xff]   ;;  %v3464_v14 = vld [vmem:[#allocation6 + $0xa4] ss:$8 sps:$4 sm:$0xff]  }
 0x318   :  { %765 = vmatpush1.bf16.msra.mxu1 %v3463_v13 }
 0x319   :  { %v448_v2 = vmul.f32 %v4067_v60, %v4067_v60  ;;  %v449_v3 = vmul.f32 %v4070_v61, %v4070_v61  ;;  %v440_v4 = vmul.f32 %v4073_v62, %v4073_v62  ;;  %v441_v5 = vmul.f32 %v4076_v63, %v4076_v63  ;;  %766 = vmatprep.subr.bf16.mxu1 %v3464_v14 }
 0x31b   :  { %v450_v6 = vadd.f32 %v449_v3, %v448_v2  ;;  %v442_v7 = vadd.f32 %v441_v5, %v440_v4 }
 0x31c   :  { %767 = vmatpush1.bf16.msra.mxu1 %v3469_v1 }
 0x31d   :  { %451 = vadd.xlane.f32.xlu1 %v450_v6  ;;  %443 = vadd.xlane.f32.xlu0 %v442_v7 }
 0x31e   :  { %768 = vmatprep.subr.bf16.mxu1 %v3470_v16 }
 0x320   :  { %769 = vmatpush1.bf16.msra.mxu1 %v3475_v19 }
 0x321   :  { %770 = vmatprep.subr.bf16.mxu1 %v3476_v20 }
 0x324   :  { %771 = vmatpush1.bf16.msra.mxu1 %v3481_v23 }
 0x325   :  { %772 = vmatprep.subr.bf16.mxu1 %v3482_v24 }
 0x328   :  { %773 = vmatpush1.bf16.msra.mxu1 %v3487_v27 }
 0x329   :  { %774 = vmatprep.subr.bf16.mxu1 %v3488_v28 }
 0x32c   :  { %775 = vmatpush1.bf16.msra.mxu1 %v3493_v31  ;;  %v1050_v31 = vld [vmem:[#allocation7] sm:$0xff] }
 0x32d   :  { %776 = vmatprep.subr.bf16.mxu1 %v3494_v32  ;;  %v1054_v32 = vld [vmem:[#allocation7 + $0x20] sm:$0xff] }
 0x32e   :  { %v3091_v34 = vcombine.low %v1050_v31, %v1054_v32 }
 0x330   :  { %777 = vmatpush1.bf16.msra.mxu1 %v3499_v35  ;;  %v3092_v35 = vcombine.high %v1050_v31, %v1054_v32 }
 0x332   :  { %1860 = vmatprep.subr.bf16.mxu1 %v3092_v35  ;;  %v1118_v35 = vld [vmem:[#allocation7 + $0x220] sm:$0xff] }
 0x3aa   :  { %v452_v36 = vpop.xlane.xlu1 %451  ;;  %v444_v37 = vpop.xlane.xlu0 %443 }
 0x3ab   :  { %v453_v38 = vmul.f32 0.00390625, %v452_v36  ;;  %v445_v39 = vmul.f32 0.00390625, %v444_v37  ;;  %v1055_v36 = vld [vmem:[#allocation7 + $0x28] sm:$0xff]  ;;  %v1058_v37 = vld [vmem:[#allocation7 + $0x40] sm:$0xff] }
 0x3ad   :  { %v454_v40 = vadd.f32 %v453_v38, %v445_v39  ;;  %v1062_v38 = vld [vmem:[#allocation7 + $0x60] sm:$0xff]  ;;  %v3093_v39 = vcombine.low %v1051_v33, %v1055_v36 }
 0x3af   :  { %v455_v41 = vmul.f32 0.5, %v454_v40  ;;  %v3094_v40 = vcombine.high %v1051_v33, %v1055_v36  ;;  %v1115_v36 = vld [vmem:[#allocation7 + $0x208] sm:$0xff] }
 0x3b1   :  { %v456_v42 = vadd.f32 1e-05, %v455_v41  ;;  %v3100_v41 = vcombine.high %v1058_v37, %v1062_v38  ;;  %1901 = vmatprep.subr.bf16.mxu0 %v3094_v40 }
 0x3b3   :  { %3694 = vrsqrt.f32 %v456_v42  ;;  %v1063_v42 = vld [vmem:[#allocation7 + $0x68] sm:$0xff] }
 0x3bd   :  { %v3695_v54 = vpop.eup %3694 }
 0x3be   :  { %v491_v59 = vmul.f32 %v3695_v54, %v4070_v61  ;;  %v459_v2 = vmul.f32 %v3695_v54, %v4076_v63  ;;  %v490_v3 = vmul.f32 %v3695_v54, %v4067_v60  ;;  %v458_v4 = vmul.f32 %v3695_v54, %v4073_v62  ;;  %v988_v60 = vld [vmem:[%s4197_s12] sm:$0x3] }
 0x3bf   :  { %v993_v61 = vrot.slane %v988_v60, %v4026_v47  ;;  %v997_v17 = vrot.slane %v988_v60, %v4029_v48  ;;  %v1074_v54 = vld [vmem:[#allocation7 + $0xc0] sm:$0xff] }
 0x3c0   :  { %v505_v5 = vmul.f32 %v501_v51, %v491_v59  ;;  %v473_v6 = vmul.f32 %v469_v53, %v459_v2  ;;  %v504_v7 = vmul.f32 %v497_v50, %v490_v3  ;;  %v472_v8 = vmul.f32 %v465_v52, %v458_v4  ;;  %v1082_v4 = vld [vmem:[#allocation7 + $0x100] sm:$0xff] }
 0x3c1   :  { %v3099_v50 = vcombine.low %v1058_v37, %v1062_v38  ;;  %v3108_v52 = vcombine.high %v1066_v43, %v1070_v44  ;;  %v3110_v53 = vcombine.high %v1067_v45, %v1071_v49  ;;  %v3109_v59 = vcombine.low %v1067_v45, %v1071_v49  ;;  %v1119_v37 = vld [vmem:[#allocation7 + $0x228] sm:$0xff] }
 0x3c2   :  { %v519_v9 = vadd.f32 %v515_v56, %v505_v5  ;;  %v487_v11 = vadd.f32 %v483_v58, %v473_v6  ;;  %v518_v13 = vadd.f32 %v511_v55, %v504_v7  ;;  %v486_v14 = vadd.f32 %v479_v57, %v472_v8  ;;  %v1078_v55 = vld [vmem:[#allocation7 + $0xe0] sm:$0xff]  ;;  %v1075_v56 = vld [vmem:[#allocation7 + $0xc8] sm:$0xff] }
 0x3c3   :  { %v1079_v57 = vld [vmem:[#allocation7 + $0xe8] sm:$0xff]  ;;  %v3107_v58 = vcombine.low %v1066_v43, %v1070_v44  ;;  %v3116_v2 = vcombine.high %v1074_v54, %v1078_v55  ;;  %v1086_v5 = vld [vmem:[#allocation7 + $0x120] sm:$0xff]  ;;  %v3115_v8 = vcombine.low %v1074_v54, %v1078_v55  ;;  %v3157_v45 = vcombine.low %v1115_v36, %v1119_v37 }
 0x3c4   :  { %v521_v15 = vpack.c.bf16 %v519_v9, %v519_v9  ;;  %v489_v0 = vpack.c.bf16 %v487_v11, %v487_v11  ;;  %v520_v1 = vpack.c.bf16 %v518_v13, %v518_v13  ;;  %v488_v16 = vpack.c.bf16 %v486_v14, %v486_v14  ;;  %v1083_v6 = vld [vmem:[#allocation7 + $0x108] sm:$0xff]  ;;  %v1090_v14 = vld [vmem:[#allocation7 + $0x140] sm:$0xff] }
 0x3c5   :  { %v3118_v3 = vcombine.high %v1075_v56, %v1079_v57  ;;  %v1087_v7 = vld [vmem:[#allocation7 + $0x128] sm:$0xff]  ;;  %v3117_v9 = vcombine.low %v1075_v56, %v1079_v57  ;;  %v3124_v11 = vcombine.high %v1082_v4, %v1086_v5 }
 0x3c6   :  { %778 = vmatprep.mubr.bf16.mxu1 %v521_v15  ;;  %979 = vmatprep.mubr.bf16.mxu0 %v489_v0  ;;  %v3126_v13 = vcombine.high %v1083_v6, %v1087_v7  ;;  %v1094_v15 = vld [vmem:[#allocation7 + $0x160] sm:$0xff]  ;;  %v1091_v0 = vld [vmem:[#allocation7 + $0x148] sm:$0xff]  ;;  %v3125_v60 = vcombine.low %v1083_v6, %v1087_v7 }
 0x3c7   :  { %779 = vmatmul.mubr.bf16.vlgmr.msra.gmra.mrb[0].mxu1 %v520_v1  ;;  %980 = vmatmul.mubr.bf16.vlgmr.msra.gmra.mrb[4].mxu0 %v488_v16  ;;  %v1095_v1 = vld [vmem:[#allocation7 + $0x168] sm:$0xff]  ;;  %v3123_v16 = vcombine.low %v1082_v4, %v1086_v5 }
 0x3c8   :  { %1861 = vmatpush1.bf16.msra.mxu1 %v3091_v34  ;;  %1902 = vmatpush1.bf16.msra.mxu0 %v3093_v39  ;;  %v1114_v34 = vld [vmem:[#allocation7 + $0x200] sm:$0xff]  ;;  %v1123_v43 = vld [vmem:[#allocation7 + $0x248] sm:$0xff] }
 0x3c9   :  { %1862 = vmatprep.subr.bf16.mxu1 %v3100_v41  ;;  %v3156_v40 = vcombine.high %v1114_v34, %v1118_v35  ;;  %v3158_v41 = vcombine.high %v1115_v36, %v1119_v37  ;;  %v3155_v44 = vcombine.low %v1114_v34, %v1118_v35  ;;  %v1135_v54 = vld [vmem:[#allocation7 + $0x2a8] sm:$0xff] }
 0x3ca   :  { %v1163_v34 = vld [vmem:[#allocation7 + $0x388] sm:$0xff] }
 0x3cb   :  { %v1167_v36 = vld [vmem:[#allocation7 + $0x3a8] sm:$0xff] }
 0x3cc   :  { %1863 = vmatpush1.bf16.msra.mxu1 %v3099_v50 }
 0x3cd   :  { %1864 = vmatprep.subr.bf16.mxu1 %v3108_v52  ;;  %v1134_v52 = vld [vmem:[#allocation7 + $0x2a0] sm:$0xff] }
 0x3d0   :  { %1865 = vmatpush1.bf16.msra.mxu1 %v3107_v58 }
 0x3d1   :  { %1866 = vmatprep.subr.bf16.mxu1 %v3116_v2 }
 0x3d4   :  { %1867 = vmatpush1.bf16.msra.mxu1 %v3115_v8 }
 0x3d5   :  { %1868 = vmatprep.subr.bf16.mxu1 %v3124_v11  ;;  %v1138_v11 = vld [vmem:[#allocation7 + $0x2c0] sm:$0xff] }
 0x3d8   :  { %1869 = vmatpush1.bf16.msra.mxu1 %v3123_v16 }
 0x49a   :  { %v780_v62 = vpop.f32.mrb[0].mxu1  ;;  %v981_v63 = vpop.f32.mrb[4].mxu0 }
 0x49b   :  { %v982_v18 = vadd.f32 %v981_v63, %v780_v62  ;;  %v782_v19 = vpop.f32.mrb[1].mxu1  ;;  %v983_v20 = vpop.f32.mrb[5].mxu0  ;;  %v3134_v62 = vcombine.high %v1091_v0, %v1095_v1  ;;  %v1098_v63 = vld [vmem:[#allocation7 + $0x180] sm:$0xff] }
 0x49c   :  { %v984_v21 = vadd.f32 %v983_v20, %v782_v19  ;;  %v784_v22 = vpop.f32.mrb[2].mxu1  ;;  %v985_v23 = vpop.f32.mrb[6].mxu0  ;;  %v1103_v19 = vld [vmem:[#allocation7 + $0x1a8] sm:$0xff]  ;;  %v3131_v20 = vcombine.low %v1090_v14, %v1094_v15 }
 0x49d   :  { %v1000_v24 = vadd.f32 %v993_v61, %v982_v18  ;;  %v785_v25 = vpop.f32.mrb[3].mxu1  ;;  %v986_v26 = vpop.f32.mrb[7].mxu0  ;;  %v3132_v61 = vcombine.high %v1090_v14, %v1094_v15  ;;  %v1099_v18 = vld [vmem:[#allocation7 + $0x188] sm:$0xff] }
 0x49e   :  { %v1001_v27 = vadd.f32 %v997_v17, %v984_v21  ;;  %v1102_v17 = vld [vmem:[#allocation7 + $0x1a0] sm:$0xff]  ;;  %v3133_v21 = vcombine.low %v1091_v0, %v1095_v1  ;;  %v3142_v23 = vcombine.high %v1099_v18, %v1103_v19  ;;  %v1107_v26 = vld [vmem:[#allocation7 + $0x1c8] sm:$0xff]  ;;  %v3141_v31 = vcombine.low %v1099_v18, %v1103_v19 }
 0x49f   :  { %v4116_v28 = vadd.f32 %v1000_v24, %v4047_v10  ;;  %v1059_v10 = vld [vmem:[#allocation7 + $0x48] sm:$0xff]  ;;  %1870 = vmatprep.subr.bf16.mxu1 %v3132_v61  ;;  %v3140_v22 = vcombine.high %v1098_v63, %v1102_v17  ;;  %v1106_v24 = vld [vmem:[#allocation7 + $0x1c0] sm:$0xff] }
 0x4a0   :  { %v4119_v29 = vadd.f32 %v1001_v27, %v4050_v12  ;;  %v3102_v12 = vcombine.high %v1059_v10, %v1063_v42  ;;  %v3101_v51 = vcombine.low %v1059_v10, %v1063_v42  ;;  %v1110_v25 = vld [vmem:[#allocation7 + $0x1e0] sm:$0xff]  ;;  %v1111_v27 = vld [vmem:[#allocation7 + $0x1e8] sm:$0xff]  ;;  %1871 = vmatpush1.bf16.msra.mxu1 %v3131_v20 }
 0x4a1   :  { %1872 = vmatprep.subr.bf16.mxu1 %v3140_v22  ;;  %v3148_v32 = vcombine.high %v1106_v24, %v1110_v25  ;;  %v3150_v33 = vcombine.high %v1107_v26, %v1111_v27  ;;  %v3147_v38 = vcombine.low %v1106_v24, %v1110_v25  ;;  %v3149_v39 = vcombine.low %v1107_v26, %v1111_v27  ;;  %v1122_v10 = vld [vmem:[#allocation7 + $0x240] sm:$0xff]  ;;  %v1139_v14 = vld [vmem:[#allocation7 + $0x2c8] sm:$0xff] }
 0x4a2   :  { %v1006_v30 = vadd.f32 %v4119_v29, %v4116_v28  ;;  %1903 = vmatprep.subr.bf16.mxu0 %v3102_v12  ;;  %v1126_v42 = vld [vmem:[#allocation7 + $0x260] sm:$0xff]  ;;  %v1127_v12 = vld [vmem:[#allocation7 + $0x268] sm:$0xff] }
 0x4a3   :  { %1904 = vmatpush1.bf16.msra.mxu0 %v3101_v51  ;;  %v3164_v49 = vcombine.high %v1122_v10, %v1126_v42  ;;  %v3166_v50 = vcombine.high %v1123_v43, %v1127_v12  ;;  %v1130_v51 = vld [vmem:[#allocation7 + $0x280] sm:$0xff]  ;;  %v3163_v55 = vcombine.low %v1122_v10, %v1126_v42  ;;  %v3165_v56 = vcombine.low %v1123_v43, %v1127_v12  ;;  %v1143_v0 = vld [vmem:[#allocation7 + $0x2e8] sm:$0xff] }
 0x4a4   :  { %1007 = vadd.xlane.f32.xlu0 %v1006_v30  ;;  %1905 = vmatprep.subr.bf16.mxu0 %v3110_v53  ;;  %v3139_v30 = vcombine.low %v1098_v63, %v1102_v17  ;;  %v1131_v53 = vld [vmem:[#allocation7 + $0x288] sm:$0xff]  ;;  %v3172_v57 = vcombine.high %v1130_v51, %v1134_v52  ;;  %v3181_v16 = vcombine.low %v1139_v14, %v1143_v0  ;;  %v1146_v61 = vld [vmem:[#allocation7 + $0x300] sm:$0xff] }
 0x4a5   :  { %v3174_v58 = vcombine.high %v1131_v53, %v1135_v54  ;;  %v3173_v2 = vcombine.low %v1131_v53, %v1135_v54  ;;  %v1147_v63 = vld [vmem:[#allocation7 + $0x308] sm:$0xff]  ;;  %v1154_v22 = vld [vmem:[#allocation7 + $0x340] sm:$0xff]  ;;  %v1057_v53 = vld [vmem:[#allocation7 + $0x38] sm:$0xff] }
 0x4a6   :  { %1873 = vmatpush1.bf16.msra.mxu1 %v3139_v30  ;;  %v1151_v18 = vld [vmem:[#allocation7 + $0x328] sm:$0xff] }
 0x4a7   :  { %1906 = vmatpush1.bf16.msra.mxu0 %v3109_v59  ;;  %1874 = vmatprep.subr.bf16.mxu1 %v3148_v32  ;;  %v3171_v59 = vcombine.low %v1130_v51, %v1134_v52  ;;  %v3189_v20 = vcombine.low %v1147_v63, %v1151_v18  ;;  %v1155_v24 = vld [vmem:[#allocation7 + $0x348] sm:$0xff]  ;;  %v1162_v32 = vld [vmem:[#allocation7 + $0x380] sm:$0xff]  ;;  %v1053_v51 = vld [vmem:[#allocation7 + $0x18] sm:$0xff] }
 0x4a8   :  { %1907 = vmatprep.subr.bf16.mxu0 %v3118_v3  ;;  %v1159_v26 = vld [vmem:[#allocation7 + $0x368] sm:$0xff] }
 0x4a9   :  { %v3197_v30 = vcombine.low %v1155_v24, %v1159_v26  ;;  %v1171_v10 = vld [vmem:[#allocation7 + $0x3c8] sm:$0xff] }
 0x4aa   :  { %1875 = vmatpush1.bf16.msra.mxu1 %v3147_v38  ;;  %v3205_v38 = vcombine.low %v1163_v34, %v1167_v36  ;;  %v1175_v12 = vld [vmem:[#allocation7 + $0x3e8] sm:$0xff] }
 0x4ab   :  { %1908 = vmatpush1.bf16.msra.mxu0 %v3117_v9  ;;  %1876 = vmatprep.subr.bf16.mxu1 %v3156_v40  ;;  %v1170_v40 = vld [vmem:[#allocation7 + $0x3c0] sm:$0xff] }
 0x4ac   :  { %1909 = vmatprep.subr.bf16.mxu0 %v3126_v13  ;;  %v1142_v13 = vld [vmem:[#allocation7 + $0x2e0] sm:$0xff] }
 0x4ad   :  { %v3180_v15 = vcombine.high %v1138_v11, %v1142_v13  ;;  %v3179_v1 = vcombine.low %v1138_v11, %v1142_v13 }
 0x4ae   :  { %1877 = vmatpush1.bf16.msra.mxu1 %v3155_v44  ;;  %v3213_v44 = vcombine.low %v1171_v10, %v1175_v12 }
 0x4af   :  { %1910 = vmatpush1.bf16.msra.mxu0 %v3125_v60  ;;  %1878 = vmatprep.subr.bf16.mxu1 %v3164_v49  ;;  %v3182_v60 = vcombine.high %v1139_v14, %v1143_v0  ;;  %v1052_v49 = vld [vmem:[#allocation7 + $0x10] sm:$0xff] }
 0x4b0   :  { %1911 = vmatprep.subr.bf16.mxu0 %v3134_v62  ;;  %v1150_v62 = vld [vmem:[#allocation7 + $0x320] sm:$0xff] }
 0x4b1   :  { %v3188_v17 = vcombine.high %v1146_v61, %v1150_v62  ;;  %v3187_v19 = vcombine.low %v1146_v61, %v1150_v62  ;;  %v1064_v61 = vld [vmem:[#allocation7 + $0x70] sm:$0xff]  ;;  %v1061_v62 = vld [vmem:[#allocation7 + $0x58] sm:$0xff] }
 0x4b2   :  { %1879 = vmatpush1.bf16.msra.mxu1 %v3163_v55  ;;  %v3097_v55 = vcombine.low %v1053_v51, %v1057_v53 }
 0x4b3   :  { %1912 = vmatpush1.bf16.msra.mxu0 %v3133_v21  ;;  %1880 = vmatprep.subr.bf16.mxu1 %v3172_v57  ;;  %v3190_v21 = vcombine.high %v1147_v63, %v1151_v18  ;;  %v1065_v63 = vld [vmem:[#allocation7 + $0x78] sm:$0xff] }
 0x4b4   :  { %1913 = vmatprep.subr.bf16.mxu0 %v3142_v23  ;;  %v1158_v23 = vld [vmem:[#allocation7 + $0x360] sm:$0xff] }
 0x4b5   :  { %v3196_v25 = vcombine.high %v1154_v22, %v1158_v23  ;;  %v3195_v27 = vcombine.low %v1154_v22, %v1158_v23  ;;  %v1073_v22 = vld [vmem:[#allocation7 + $0xb8] sm:$0xff] }
 0x4b6   :  { %1881 = vmatpush1.bf16.msra.mxu1 %v3171_v59 }
 0x4b7   :  { %1914 = vmatpush1.bf16.msra.mxu0 %v3141_v31  ;;  %1882 = vmatprep.subr.bf16.mxu1 %v3180_v15  ;;  %v3198_v31 = vcombine.high %v1155_v24, %v1159_v26  ;;  %v3105_v24 = vcombine.low %v1061_v62, %v1065_v63 }
 0x4b8   :  { %1915 = vmatprep.subr.bf16.mxu0 %v3150_v33  ;;  %v1166_v33 = vld [vmem:[#allocation7 + $0x3a0] sm:$0xff] }
 0x4b9   :  { %v3204_v35 = vcombine.high %v1162_v32, %v1166_v33  ;;  %v3203_v37 = vcombine.low %v1162_v32, %v1166_v33  ;;  %v1081_v32 = vld [vmem:[#allocation7 + $0xf8] sm:$0xff] }
 0x4ba   :  { %1883 = vmatpush1.bf16.msra.mxu1 %v3179_v1 }
 0x4bb   :  { %1916 = vmatpush1.bf16.msra.mxu0 %v3149_v39  ;;  %1884 = vmatprep.subr.bf16.mxu1 %v3188_v17  ;;  %v3206_v39 = vcombine.high %v1163_v34, %v1167_v36 }
 0x4bc   :  { %1917 = vmatprep.subr.bf16.mxu0 %v3158_v41  ;;  %v1174_v41 = vld [vmem:[#allocation7 + $0x3e0] sm:$0xff] }
 0x4bd   :  { %v3211_v42 = vcombine.low %v1170_v40, %v1174_v41  ;;  %v3212_v43 = vcombine.high %v1170_v40, %v1174_v41  ;;  %v1089_v40 = vld [vmem:[#allocation7 + $0x138] sm:$0xff] }
 0x4be   :  { %1885 = vmatpush1.bf16.msra.mxu1 %v3187_v19  ;;  %v1068_v19 = vld [vmem:[#allocation7 + $0x90] sm:$0xff] }
 0x4bf   :  { %1918 = vmatpush1.bf16.msra.mxu0 %v3157_v45  ;;  %1886 = vmatprep.subr.bf16.mxu1 %v3196_v25  ;;  %v3214_v45 = vcombine.high %v1171_v10, %v1175_v12  ;;  %v1092_v12 = vld [vmem:[#allocation7 + $0x150] sm:$0xff] }
 0x4c0   :  { %1919 = vmatprep.subr.bf16.mxu0 %v3166_v50  ;;  %v1056_v50 = vld [vmem:[#allocation7 + $0x30] sm:$0xff] }
 0x4c1   :  { %v3096_v52 = vcombine.high %v1052_v49, %v1056_v50  ;;  %v3095_v54 = vcombine.low %v1052_v49, %v1056_v50  ;;  %v1097_v49 = vld [vmem:[#allocation7 + $0x178] sm:$0xff] }
 0x4c2   :  { %1887 = vmatpush1.bf16.msra.mxu1 %v3195_v27  ;;  %v1076_v27 = vld [vmem:[#allocation7 + $0xd0] sm:$0xff] }
 0x4c3   :  { %1920 = vmatpush1.bf16.msra.mxu0 %v3165_v56  ;;  %1888 = vmatprep.subr.bf16.mxu1 %v3204_v35  ;;  %v3098_v56 = vcombine.high %v1053_v51, %v1057_v53 }
 0x4c4   :  { %1921 = vmatprep.subr.bf16.mxu0 %v3174_v58 }
 0x4c6   :  { %1889 = vmatpush1.bf16.msra.mxu1 %v3203_v37  ;;  %v1084_v37 = vld [vmem:[#allocation7 + $0x110] sm:$0xff] }
 0x4c7   :  { %1922 = vmatpush1.bf16.msra.mxu0 %v3173_v2  ;;  %1890 = vmatprep.subr.bf16.mxu1 %v3212_v43  ;;  %v1004_v2 = vld [vmem:[%s4198_s13] sm:$0x3] }
 0x4c8   :  { %1923 = vmatprep.subr.bf16.mxu0 %v3182_v60  ;;  %v1060_v60 = vld [vmem:[#allocation7 + $0x50] sm:$0xff] }
 0x4c9   :  { %v3103_v23 = vcombine.low %v1060_v60, %v1064_v61 }
 0x4ca   :  { %1891 = vmatpush1.bf16.msra.mxu1 %v3211_v42 }
 0x4cb   :  { %1924 = vmatpush1.bf16.msra.mxu0 %v3181_v16  ;;  %1942 = vmatprep.subr.bf16.mxu1 %v3096_v52 }
 0x4cc   :  { %1925 = vmatprep.subr.bf16.mxu0 %v3190_v21  ;;  %v1069_v21 = vld [vmem:[#allocation7 + $0x98] sm:$0xff] }
 0x4cd   :  { %v3114_v26 = vcombine.high %v1069_v21, %v1073_v22  ;;  %v3113_v34 = vcombine.low %v1069_v21, %v1073_v22 }
 0x4cf   :  { %1926 = vmatpush1.bf16.msra.mxu0 %v3189_v20  ;;  %v1072_v20 = vld [vmem:[#allocation7 + $0xb0] sm:$0xff] }
 0x4d0   :  { %1927 = vmatprep.subr.bf16.mxu0 %v3198_v31  ;;  %v3112_v25 = vcombine.high %v1068_v19, %v1072_v20  ;;  %v1077_v31 = vld [vmem:[#allocation7 + $0xd8] sm:$0xff]  ;;  %v3111_v33 = vcombine.low %v1068_v19, %v1072_v20  ;;  %v1124_v19 = vld [vmem:[#allocation7 + $0x250] sm:$0xff] }
 0x4d1   :  { %v3122_v36 = vcombine.high %v1077_v31, %v1081_v32  ;;  %v3121_v10 = vcombine.low %v1077_v31, %v1081_v32  ;;  %v1129_v20 = vld [vmem:[#allocation7 + $0x278] sm:$0xff] }
 0x4d3   :  { %1928 = vmatpush1.bf16.msra.mxu0 %v3197_v30  ;;  %v1080_v30 = vld [vmem:[#allocation7 + $0xf0] sm:$0xff] }
 0x4d4   :  { %1929 = vmatprep.subr.bf16.mxu0 %v3206_v39  ;;  %v3120_v35 = vcombine.high %v1076_v27, %v1080_v30  ;;  %v1085_v39 = vld [vmem:[#allocation7 + $0x118] sm:$0xff]  ;;  %v3119_v41 = vcombine.low %v1076_v27, %v1080_v30 }
 0x4d5   :  { %v3130_v43 = vcombine.high %v1085_v39, %v1089_v40  ;;  %v3129_v51 = vcombine.low %v1085_v39, %v1089_v40  ;;  %v1133_v27 = vld [vmem:[#allocation7 + $0x298] sm:$0xff] }
 0x4d6   :  { %v1137_v30 = vld [vmem:[#allocation7 + $0x2b8] sm:$0xff] }
 0x4d7   :  { %1930 = vmatpush1.bf16.msra.mxu0 %v3205_v38  ;;  %v1088_v38 = vld [vmem:[#allocation7 + $0x130] sm:$0xff]  ;;  %v3177_v40 = vcombine.low %v1133_v27, %v1137_v30 }
 0x4d8   :  { %1931 = vmatprep.subr.bf16.mxu0 %v3214_v45  ;;  %v3128_v42 = vcombine.high %v1084_v37, %v1088_v38  ;;  %v1093_v45 = vld [vmem:[#allocation7 + $0x158] sm:$0xff]  ;;  %v3127_v50 = vcombine.low %v1084_v37, %v1088_v38 }
 0x4d9   :  { %v3138_v53 = vcombine.high %v1093_v45, %v1097_v49  ;;  %v1141_v37 = vld [vmem:[#allocation7 + $0x2d8] sm:$0xff] }
 0x4da   :  { %v1145_v38 = vld [vmem:[#allocation7 + $0x2f8] sm:$0xff] }
 0x4db   :  { %1932 = vmatpush1.bf16.msra.mxu0 %v3213_v44  ;;  %v1096_v44 = vld [vmem:[#allocation7 + $0x170] sm:$0xff] }
 0x4dc   :  { %1983 = vmatprep.subr.bf16.mxu0 %v3098_v56  ;;  %v3136_v52 = vcombine.high %v1092_v12, %v1096_v44  ;;  %v1101_v56 = vld [vmem:[#allocation7 + $0x198] sm:$0xff] }
 0x531   :  { %v1008_v3 = vpop.xlane.xlu0 %1007 }
 0x532   :  { %v1009_v4 = vmul.f32 0.00390625, %v1008_v3  ;;  %v1005_v3 = vld [vmem:[%s4199_s14] sm:$0x3] }
 0x533   :  { %v1043_v13 = vrot.slane %v1005_v3, %v4029_v48  ;;  %v1039_v14 = vrot.slane %v1005_v3, %v4026_v47 }
 0x534   :  { %v4124_v5 = vsub.f32 %v4116_v28, %v1009_v4  ;;  %v4127_v6 = vsub.f32 %v4119_v29, %v1009_v4  ;;  %v1030_v4 = vrot.slane %v1004_v2, %v4029_v48 }
 0x536   :  { %v1012_v7 = vmul.f32 %v4124_v5, %v4124_v5  ;;  %v1013_v8 = vmul.f32 %v4127_v6, %v4127_v6 }
 0x538   :  { %v1014_v9 = vadd.f32 %v1013_v8, %v1012_v7  ;;  %v1026_v7 = vrot.slane %v1004_v2, %v4026_v47 }
 0x53a   :  { %1015 = vadd.xlane.f32.xlu1 %v1014_v9 }
 0x5c7   :  { %v1016_v57 = vpop.xlane.xlu1 %1015 }
 0x5c8   :  { %v1017_v58 = vmul.f32 0.00390625, %v1016_v57  ;;  %v1105_v57 = vld [vmem:[#allocation7 + $0x1b8] sm:$0xff] }
 0x5c9   :  { %v3146_v3 = vcombine.high %v1101_v56, %v1105_v57 }
 0x5ca   :  { %v1018_v59 = vadd.f32 1e-05, %v1017_v58  ;;  %v3135_v58 = vcombine.low %v1092_v12, %v1096_v44  ;;  %v1149_v12 = vld [vmem:[#allocation7 + $0x318] sm:$0xff] }
 0x5cb   :  { %v1153_v44 = vld [vmem:[#allocation7 + $0x338] sm:$0xff] }
 0x5cc   :  { %3696 = vrsqrt.f32 %v1018_v59  ;;  %v3137_v59 = vcombine.low %v1093_v45, %v1097_v49  ;;  %v3185_v49 = vcombine.low %v1141_v37, %v1145_v38 }
 0x5d6   :  { %v3697_v8 = vpop.eup %3696 }
 0x5d7   :  { %v1020_v9 = vmul.f32 %v3697_v8, %v4124_v5  ;;  %v1021_v11 = vmul.f32 %v3697_v8, %v4127_v6  ;;  %v3104_v5 = vcombine.high %v1060_v60, %v1064_v61  ;;  %v3106_v6 = vcombine.high %v1061_v62, %v1065_v63  ;;  %v1109_v8 = vld [vmem:[#allocation7 + $0x1d8] sm:$0xff] }
 0x5d8   :  { %v1121_v60 = vld [vmem:[#allocation7 + $0x238] sm:$0xff] }
 0x5d9   :  { %v1034_v15 = vmul.f32 %v1030_v4, %v1021_v11  ;;  %v1033_v0 = vmul.f32 %v1026_v7, %v1020_v9  ;;  %v1108_v4 = vld [vmem:[#allocation7 + $0x1d0] sm:$0xff]  ;;  %v1113_v9 = vld [vmem:[#allocation7 + $0x1f8] sm:$0xff] }
 0x5da   :  { %v1112_v7 = vld [vmem:[#allocation7 + $0x1f0] sm:$0xff]  ;;  %v3153_v62 = vcombine.low %v1109_v8, %v1113_v9 }
 0x5db   :  { %v1047_v1 = vadd.f32 %v1043_v13, %v1034_v15  ;;  %v1046_v16 = vadd.f32 %v1039_v14, %v1033_v0  ;;  %v3145_v13 = vcombine.low %v1101_v56, %v1105_v57  ;;  %v3152_v14 = vcombine.high %v1108_v4, %v1112_v7  ;;  %v1116_v0 = vld [vmem:[#allocation7 + $0x210] sm:$0xff] }
 0x5dc   :  { %v3154_v15 = vcombine.high %v1109_v8, %v1113_v9  ;;  %v3151_v61 = vcombine.low %v1108_v4, %v1112_v7  ;;  %v3193_v57 = vcombine.low %v1149_v12, %v1153_v44  ;;  %v1165_v4 = vld [vmem:[#allocation7 + $0x398] sm:$0xff] }
 0x5dd   :  { %v1049_v17 = vpack.c.bf16 %v1047_v1, %v1047_v1  ;;  %v4145_v18 = vpack.c.bf16 %v1046_v16, %v1046_v16  ;;  %v1120_v1 = vld [vmem:[#allocation7 + $0x230] sm:$0xff]  ;;  %v1117_v16 = vld [vmem:[#allocation7 + $0x218] sm:$0xff] }
 0x5de   :  { %v3160_v63 = vcombine.high %v1116_v0, %v1120_v1  ;;  %v3159_v21 = vcombine.low %v1116_v0, %v1120_v1  ;;  %v3161_v22 = vcombine.low %v1117_v16, %v1121_v60  ;;  %v1169_v7 = vld [vmem:[#allocation7 + $0x3b8] sm:$0xff] }
 0x5df   :  { %1892 = vmatprep.mubr.bf16.mxu1 %v1049_v17  ;;  %1933 = vmatprep.mubr.bf16.mxu0 %v1049_v17  ;;  %v1173_v0 = vld [vmem:[#allocation7 + $0x3d8] sm:$0xff] }
 0x5e0   :  { %1893 = vmatmul.mubr.bf16.vlgmr.msra.gmra.mrb[4].mxu1 %v4145_v18  ;;  %1934 = vmatmul.mubr.bf16.vlgmr.msra.gmra.mrb[8].mxu0 %v4145_v18  ;;  %v1177_v1 = vld [vmem:[#allocation7 + $0x3f8] sm:$0xff] }
 0x5e1   :  { %1943 = vmatpush1.bf16.msra.mxu1 %v3095_v54  ;;  %1984 = vmatpush1.bf16.msra.mxu0 %v3097_v55  ;;  %v1100_v54 = vld [vmem:[#allocation7 + $0x190] sm:$0xff] }
 0x5e2   :  { %1974 = vmatprep.mubr.bf16.mxu1 %v1049_v17  ;;  %2015 = vmatprep.mubr.bf16.mxu0 %v1049_v17  ;;  %v1104_v55 = vld [vmem:[#allocation7 + $0x1b0] sm:$0xff]  ;;  %v3162_v17 = vcombine.high %v1117_v16, %v1121_v60  ;;  %v3209_v60 = vcombine.low %v1165_v4, %v1169_v7 }
 0x5e3   :  { %1944 = vmatprep.subr.bf16.mxu1 %v3104_v5  ;;  %1985 = vmatprep.subr.bf16.mxu0 %v3106_v6  ;;  %v3144_v2 = vcombine.high %v1100_v54, %v1104_v55  ;;  %v3143_v11 = vcombine.low %v1100_v54, %v1104_v55  ;;  %v1128_v5 = vld [vmem:[#allocation7 + $0x270] sm:$0xff]  ;;  %v1125_v6 = vld [vmem:[#allocation7 + $0x258] sm:$0xff] }
 0x5e4   :  { %v3167_v31 = vcombine.low %v1124_v19, %v1128_v5  ;;  %v3169_v32 = vcombine.low %v1125_v6, %v1129_v20  ;;  %v1157_v54 = vld [vmem:[#allocation7 + $0x358] sm:$0xff] }
 0x5e5   :  { %1945 = vmatpush1.bf16.msra.mxu1 %v3103_v23  ;;  %1986 = vmatpush1.bf16.msra.mxu0 %v3105_v24  ;;  %v3168_v23 = vcombine.high %v1124_v19, %v1128_v5  ;;  %v3170_v24 = vcombine.high %v1125_v6, %v1129_v20  ;;  %v1161_v55 = vld [vmem:[#allocation7 + $0x378] sm:$0xff]  ;;  %v3502_v19 = vld [vmem:[#allocation9 + $0x4] ss:$8 sps:$4 sm:$0xff]   ;;  %v3500_v6 = vld [vmem:[#allocation9] ss:$8 sps:$4 sm:$0xff]  }
 0x5e6   :  { %1946 = vmatprep.subr.bf16.mxu1 %v3112_v25  ;;  %1987 = vmatprep.subr.bf16.mxu0 %v3114_v26  ;;  %v1132_v25 = vld [vmem:[#allocation7 + $0x290] sm:$0xff]  ;;  %v3201_v9 = vcombine.low %v1157_v54, %v1161_v55  ;;  %v3505_v5 = vld [vmem:[#allocation9 + $0x104] ss:$8 sps:$4 sm:$0xff]   ;;  %v3503_v20 = vld [vmem:[#allocation9 + $0x100] ss:$8 sps:$4 sm:$0xff]  }
 0x5e7   :  { %v1136_v26 = vld [vmem:[#allocation7 + $0x2b0] sm:$0xff] }
 0x5e8   :  { %v3175_v39 = vcombine.low %v1132_v25, %v1136_v26 }
 0x5e9   :  { %1947 = vmatpush1.bf16.msra.mxu1 %v3111_v33  ;;  %1988 = vmatpush1.bf16.msra.mxu0 %v3113_v34  ;;  %v3176_v33 = vcombine.high %v1132_v25, %v1136_v26  ;;  %v3178_v34 = vcombine.high %v1133_v27, %v1137_v30  ;;  %v3514_v25 = vld [vmem:[#allocation9 + $0x24] ss:$8 sps:$4 sm:$0xff]   ;;  %v3512_v27 = vld [vmem:[#allocation9 + $0x20] ss:$8 sps:$4 sm:$0xff]  }
 0x5ea   :  { %1948 = vmatprep.subr.bf16.mxu1 %v3120_v35  ;;  %1989 = vmatprep.subr.bf16.mxu0 %v3122_v36  ;;  %v1140_v35 = vld [vmem:[#allocation7 + $0x2d0] sm:$0xff]  ;;  %v3517_v26 = vld [vmem:[#allocation9 + $0x124] ss:$8 sps:$4 sm:$0xff]   ;;  %v3515_v30 = vld [vmem:[#allocation9 + $0x120] ss:$8 sps:$4 sm:$0xff]  }
 0x5eb   :  { %v1144_v36 = vld [vmem:[#allocation7 + $0x2f0] sm:$0xff] }
 0x5ec   :  { %v3183_v45 = vcombine.low %v1140_v35, %v1144_v36 }
 0x5ed   :  { %1949 = vmatpush1.bf16.msra.mxu1 %v3119_v41  ;;  %1990 = vmatpush1.bf16.msra.mxu0 %v3121_v10  ;;  %v3184_v41 = vcombine.high %v1140_v35, %v1144_v36  ;;  %v3186_v10 = vcombine.high %v1141_v37, %v1145_v38  ;;  %v3529_v35 = vld [vmem:[#allocation9 + $0x144] ss:$8 sps:$4 sm:$0xff]   ;;  %v3524_v36 = vld [vmem:[#allocation9 + $0x40] ss:$8 sps:$4 sm:$0xff]   ;;  %v3532_v38 = vld [vmem:[#allocation9 + $0x54] ss:$8 sps:$4 sm:$0xff]  }
 0x5ee   :  { %1950 = vmatprep.subr.bf16.mxu1 %v3128_v42  ;;  %1991 = vmatprep.subr.bf16.mxu0 %v3130_v43  ;;  %v1148_v42 = vld [vmem:[#allocation7 + $0x310] sm:$0xff]  ;;  %v3527_v37 = vld [vmem:[#allocation9 + $0x140] ss:$8 sps:$4 sm:$0xff]  }
 0x5ef   :  { %v1152_v43 = vld [vmem:[#allocation7 + $0x330] sm:$0xff] }
 0x5f0   :  { %v3191_v56 = vcombine.low %v1148_v42, %v1152_v43 }
 0x5f1   :  { %1951 = vmatpush1.bf16.msra.mxu1 %v3127_v50  ;;  %1992 = vmatpush1.bf16.msra.mxu0 %v3129_v51  ;;  %v3192_v50 = vcombine.high %v1148_v42, %v1152_v43  ;;  %v3194_v51 = vcombine.high %v1149_v12, %v1153_v44  ;;  %v3541_v42 = vld [vmem:[#allocation9 + $0x164] ss:$8 sps:$4 sm:$0xff]   ;;  %v3536_v43 = vld [vmem:[#allocation9 + $0x60] ss:$8 sps:$4 sm:$0xff]   ;;  %v3544_v44 = vld [vmem:[#allocation9 + $0x74] ss:$8 sps:$4 sm:$0xff]  }
 0x5f2   :  { %1952 = vmatprep.subr.bf16.mxu1 %v3136_v52  ;;  %1993 = vmatprep.subr.bf16.mxu0 %v3138_v53  ;;  %v1156_v52 = vld [vmem:[#allocation7 + $0x350] sm:$0xff]  ;;  %v3539_v12 = vld [vmem:[#allocation9 + $0x160] ss:$8 sps:$4 sm:$0xff]  }
 0x5f3   :  { %v1160_v53 = vld [vmem:[#allocation7 + $0x370] sm:$0xff] }
 0x5f4   :  { %v3199_v8 = vcombine.low %v1156_v52, %v1160_v53 }
 0x5f5   :  { %1953 = vmatpush1.bf16.msra.mxu1 %v3135_v58  ;;  %1994 = vmatpush1.bf16.msra.mxu0 %v3137_v59  ;;  %v3200_v58 = vcombine.high %v1156_v52, %v1160_v53  ;;  %v3202_v59 = vcombine.high %v1157_v54, %v1161_v55  ;;  %v3553_v52 = vld [vmem:[#allocation9 + $0x184] ss:$8 sps:$4 sm:$0xff]   ;;  %v3548_v53 = vld [vmem:[#allocation9 + $0x80] ss:$8 sps:$4 sm:$0xff]   ;;  %v3556_v55 = vld [vmem:[#allocation9 + $0x94] ss:$8 sps:$4 sm:$0xff]  }
 0x5f6   :  { %1954 = vmatprep.subr.bf16.mxu1 %v3144_v2  ;;  %1995 = vmatprep.subr.bf16.mxu0 %v3146_v3  ;;  %v1164_v2 = vld [vmem:[#allocation7 + $0x390] sm:$0xff]  ;;  %v3551_v54 = vld [vmem:[#allocation9 + $0x180] ss:$8 sps:$4 sm:$0xff]  }
 0x5f7   :  { %v1168_v3 = vld [vmem:[#allocation7 + $0x3b0] sm:$0xff] }
 0x5f8   :  { %v3207_v16 = vcombine.low %v1164_v2, %v1168_v3 }
 0x5f9   :  { %1955 = vmatpush1.bf16.msra.mxu1 %v3143_v11  ;;  %1996 = vmatpush1.bf16.msra.mxu0 %v3145_v13  ;;  %v3208_v11 = vcombine.high %v1164_v2, %v1168_v3  ;;  %v3210_v13 = vcombine.high %v1165_v4, %v1169_v7  ;;  %v3565_v2 = vld [vmem:[#allocation9 + $0x1a4] ss:$8 sps:$4 sm:$0xff]   ;;  %v3560_v3 = vld [vmem:[#allocation9 + $0xa0] ss:$8 sps:$4 sm:$0xff]   ;;  %v3568_v7 = vld [vmem:[#allocation9 + $0xb4] ss:$8 sps:$4 sm:$0xff]  }
 0x5fa   :  { %1956 = vmatprep.subr.bf16.mxu1 %v3152_v14  ;;  %1997 = vmatprep.subr.bf16.mxu0 %v3154_v15  ;;  %v1172_v14 = vld [vmem:[#allocation7 + $0x3d0] sm:$0xff]  ;;  %v3563_v4 = vld [vmem:[#allocation9 + $0x1a0] ss:$8 sps:$4 sm:$0xff]  }
 0x5fb   :  { %v1176_v15 = vld [vmem:[#allocation7 + $0x3f0] sm:$0xff] }
 0x5fd   :  { %1957 = vmatpush1.bf16.msra.mxu1 %v3151_v61  ;;  %1998 = vmatpush1.bf16.msra.mxu0 %v3153_v62  ;;  %v3216_v61 = vcombine.high %v1172_v14, %v1176_v15  ;;  %v3218_v62 = vcombine.high %v1173_v0, %v1177_v1 }
 0x5fe   :  { %1958 = vmatprep.subr.bf16.mxu1 %v3160_v63  ;;  %1999 = vmatprep.subr.bf16.mxu0 %v3162_v17  ;;  %v3215_v63 = vcombine.low %v1172_v14, %v1176_v15  ;;  %v3217_v17 = vcombine.low %v1173_v0, %v1177_v1  ;;  %v3577_v14 = vld [vmem:[#allocation9 + $0x1c4] ss:$8 sps:$4 sm:$0xff]   ;;  %v3572_v15 = vld [vmem:[#allocation9 + $0xc0] ss:$8 sps:$4 sm:$0xff]   ;;  %v3580_v1 = vld [vmem:[#allocation9 + $0xd4] ss:$8 sps:$4 sm:$0xff]  }
 0x5ff   :  { %v3575_v0 = vld [vmem:[#allocation9 + $0x1c0] ss:$8 sps:$4 sm:$0xff]  }
 0x601   :  { %1959 = vmatpush1.bf16.msra.mxu1 %v3159_v21  ;;  %2000 = vmatpush1.bf16.msra.mxu0 %v3161_v22  ;;  %v3508_v21 = vld [vmem:[#allocation9 + $0x14] ss:$8 sps:$4 sm:$0xff]  }
 0x602   :  { %1960 = vmatprep.subr.bf16.mxu1 %v3168_v23  ;;  %2001 = vmatprep.subr.bf16.mxu0 %v3170_v24  ;;  %v3511_v22 = vld [vmem:[#allocation9 + $0x114] ss:$8 sps:$4 sm:$0xff]   ;;  %v3506_v23 = vld [vmem:[#allocation9 + $0x10] ss:$8 sps:$4 sm:$0xff]  }
 0x603   :  { %v3509_v24 = vld [vmem:[#allocation9 + $0x110] ss:$8 sps:$4 sm:$0xff]  }
 0x605   :  { %1961 = vmatpush1.bf16.msra.mxu1 %v3167_v31  ;;  %2002 = vmatpush1.bf16.msra.mxu0 %v3169_v32  ;;  %v3520_v31 = vld [vmem:[#allocation9 + $0x34] ss:$8 sps:$4 sm:$0xff]  }
 0x606   :  { %1962 = vmatprep.subr.bf16.mxu1 %v3176_v33  ;;  %2003 = vmatprep.subr.bf16.mxu0 %v3178_v34  ;;  %v3523_v32 = vld [vmem:[#allocation9 + $0x134] ss:$8 sps:$4 sm:$0xff]   ;;  %v3518_v33 = vld [vmem:[#allocation9 + $0x30] ss:$8 sps:$4 sm:$0xff]   ;;  %v3526_v34 = vld [vmem:[#allocation9 + $0x44] ss:$8 sps:$4 sm:$0xff]  }
 0x609   :  { %1963 = vmatpush1.bf16.msra.mxu1 %v3175_v39  ;;  %2004 = vmatpush1.bf16.msra.mxu0 %v3177_v40  ;;  %v3535_v39 = vld [vmem:[#allocation9 + $0x154] ss:$8 sps:$4 sm:$0xff]   ;;  %v3530_v40 = vld [vmem:[#allocation9 + $0x50] ss:$8 sps:$4 sm:$0xff]  }
 0x60a   :  { %1964 = vmatprep.subr.bf16.mxu1 %v3184_v41  ;;  %2005 = vmatprep.subr.bf16.mxu0 %v3186_v10  ;;  %v3533_v41 = vld [vmem:[#allocation9 + $0x150] ss:$8 sps:$4 sm:$0xff]   ;;  %v3538_v10 = vld [vmem:[#allocation9 + $0x64] ss:$8 sps:$4 sm:$0xff]  }
 0x60d   :  { %1965 = vmatpush1.bf16.msra.mxu1 %v3183_v45  ;;  %2006 = vmatpush1.bf16.msra.mxu0 %v3185_v49  ;;  %v3547_v45 = vld [vmem:[#allocation9 + $0x174] ss:$8 sps:$4 sm:$0xff]   ;;  %v3542_v49 = vld [vmem:[#allocation9 + $0x70] ss:$8 sps:$4 sm:$0xff]  }
 0x60e   :  { %1966 = vmatprep.subr.bf16.mxu1 %v3192_v50  ;;  %2007 = vmatprep.subr.bf16.mxu0 %v3194_v51  ;;  %v3545_v50 = vld [vmem:[#allocation9 + $0x170] ss:$8 sps:$4 sm:$0xff]   ;;  %v3550_v51 = vld [vmem:[#allocation9 + $0x84] ss:$8 sps:$4 sm:$0xff]  }
 0x611   :  { %1967 = vmatpush1.bf16.msra.mxu1 %v3191_v56  ;;  %2008 = vmatpush1.bf16.msra.mxu0 %v3193_v57  ;;  %v3559_v56 = vld [vmem:[#allocation9 + $0x194] ss:$8 sps:$4 sm:$0xff]   ;;  %v3554_v57 = vld [vmem:[#allocation9 + $0x90] ss:$8 sps:$4 sm:$0xff]  }
 0x612   :  { %1968 = vmatprep.subr.bf16.mxu1 %v3200_v58  ;;  %2009 = vmatprep.subr.bf16.mxu0 %v3202_v59  ;;  %v3557_v58 = vld [vmem:[#allocation9 + $0x190] ss:$8 sps:$4 sm:$0xff]   ;;  %v3562_v59 = vld [vmem:[#allocation9 + $0xa4] ss:$8 sps:$4 sm:$0xff]  }
 0x615   :  { %1969 = vmatpush1.bf16.msra.mxu1 %v3199_v8  ;;  %2010 = vmatpush1.bf16.msra.mxu0 %v3201_v9  ;;  %v3571_v8 = vld [vmem:[#allocation9 + $0x1b4] ss:$8 sps:$4 sm:$0xff]   ;;  %v3566_v9 = vld [vmem:[#allocation9 + $0xb0] ss:$8 sps:$4 sm:$0xff]  }
 0x616   :  { %1970 = vmatprep.subr.bf16.mxu1 %v3208_v11  ;;  %2011 = vmatprep.subr.bf16.mxu0 %v3210_v13  ;;  %v3569_v11 = vld [vmem:[#allocation9 + $0x1b0] ss:$8 sps:$4 sm:$0xff]   ;;  %v3574_v13 = vld [vmem:[#allocation9 + $0xc4] ss:$8 sps:$4 sm:$0xff]  }
 0x619   :  { %1971 = vmatpush1.bf16.msra.mxu1 %v3207_v16  ;;  %2012 = vmatpush1.bf16.msra.mxu0 %v3209_v60  ;;  %v3583_v16 = vld [vmem:[#allocation9 + $0x1d4] ss:$8 sps:$4 sm:$0xff]   ;;  %v3578_v60 = vld [vmem:[#allocation9 + $0xd0] ss:$8 sps:$4 sm:$0xff]  }
 0x61a   :  { %1972 = vmatprep.subr.bf16.mxu1 %v3216_v61  ;;  %2013 = vmatprep.subr.bf16.mxu0 %v3218_v62  ;;  %v3581_v61 = vld [vmem:[#allocation9 + $0x1d0] ss:$8 sps:$4 sm:$0xff]   ;;  %v3586_v62 = vld [vmem:[#allocation9 + $0xe4] ss:$8 sps:$4 sm:$0xff]  }
 0x61d   :  { %1973 = vmatpush1.bf16.msra.mxu1 %v3215_v63  ;;  %2014 = vmatpush1.bf16.msra.mxu0 %v3217_v17  ;;  %v3589_v63 = vld [vmem:[#allocation9 + $0x1e4] ss:$8 sps:$4 sm:$0xff]   ;;  %v3584_v17 = vld [vmem:[#allocation9 + $0xe0] ss:$8 sps:$4 sm:$0xff]  }
 0x61e   :  { %2820 = vmatprep.subr.bf16.mxu1 %v3502_v19  ;;  %2861 = vmatprep.subr.bf16.mxu0 %v3505_v5  ;;  %v3587_v19 = vld [vmem:[#allocation9 + $0x1e0] ss:$8 sps:$4 sm:$0xff]   ;;  %v3592_v5 = vld [vmem:[#allocation9 + $0xf4] ss:$8 sps:$4 sm:$0xff]  }
 0x620   :  { %1975 = vmatmul.mubr.bf16.vlgmr.msra.gmra.mrb[8].mxu1 %v4145_v18  ;;  %2016 = vmatmul.mubr.bf16.vlgmr.msra.gmra.mrb[12].mxu0 %v4145_v18  ;;  %v3521_v18 = vld [vmem:[#allocation9 + $0x130] ss:$8 sps:$4 sm:$0xff]  }
 0x621   :  { %2821 = vmatpush1.bf16.msra.mxu1 %v3500_v6  ;;  %2862 = vmatpush1.bf16.msra.mxu0 %v3503_v20  ;;  %v3595_v6 = vld [vmem:[#allocation9 + $0x1f4] ss:$8 sps:$4 sm:$0xff]   ;;  %v3590_v20 = vld [vmem:[#allocation9 + $0xf0] ss:$8 sps:$4 sm:$0xff]  }
 0x622   :  { %2822 = vmatprep.subr.bf16.mxu1 %v3508_v21  ;;  %2863 = vmatprep.subr.bf16.mxu0 %v3511_v22  ;;  %v3593_v21 = vld [vmem:[#allocation9 + $0x1f0] ss:$8 sps:$4 sm:$0xff]   ;;  %v3598_v22 = vld [vmem:[#allocation9 + $0x204] ss:$8 sps:$4 sm:$0xff]  }
 0x625   :  { %2823 = vmatpush1.bf16.msra.mxu1 %v3506_v23  ;;  %2864 = vmatpush1.bf16.msra.mxu0 %v3509_v24  ;;  %v3601_v23 = vld [vmem:[#allocation9 + $0x304] ss:$8 sps:$4 sm:$0xff]   ;;  %v1190_v24 = vsub.s32 2, %v4023_v46 }
 0x626   :  { %2824 = vmatprep.subr.bf16.mxu1 %v3514_v25  ;;  %2865 = vmatprep.subr.bf16.mxu0 %v3517_v26  ;;  %v4155_v25 = vld [vmem:[%s4201_s16] sm:$0xff]  ;;  %v1194_v26 = vsub.s32 3, %v4023_v46 }
 0x629   :  { %2825 = vmatpush1.bf16.msra.mxu1 %v3512_v27  ;;  %2866 = vmatpush1.bf16.msra.mxu0 %v3515_v30  ;;  %v1183_v27 = vrot.slane %v4155_v25, %v4026_v47  ;;  %v1191_v30 = vrot.slane %v4155_v25, %v1190_v24  ;;  %v3644_v24 = vld [vmem:[#allocation9 + $0x280] ss:$8 sps:$4 sm:$0xff]  }
 0x62a   :  { %2826 = vmatprep.subr.bf16.mxu1 %v3520_v31  ;;  %2867 = vmatprep.subr.bf16.mxu0 %v3523_v32  ;;  %v1187_v31 = vrot.slane %v4155_v25, %v4029_v48  ;;  %v1195_v32 = vrot.slane %v4155_v25, %v1194_v26  ;;  %v3647_v26 = vld [vmem:[#allocation9 + $0x380] ss:$8 sps:$4 sm:$0xff]  }
 0x62d   :  { %2827 = vmatpush1.bf16.msra.mxu1 %v3518_v33  ;;  %2868 = vmatpush1.bf16.msra.mxu0 %v3521_v18 }
 0x62e   :  { %2828 = vmatprep.subr.bf16.mxu1 %v3526_v34  ;;  %2869 = vmatprep.subr.bf16.mxu0 %v3529_v35 }
 0x631   :  { %2829 = vmatpush1.bf16.msra.mxu1 %v3524_v36  ;;  %2870 = vmatpush1.bf16.msra.mxu0 %v3527_v37 }
 0x632   :  { %2830 = vmatprep.subr.bf16.mxu1 %v3532_v38  ;;  %2871 = vmatprep.subr.bf16.mxu0 %v3535_v39 }
 0x635   :  { %2831 = vmatpush1.bf16.msra.mxu1 %v3530_v40  ;;  %2872 = vmatpush1.bf16.msra.mxu0 %v3533_v41 }
 0x636   :  { %2832 = vmatprep.subr.bf16.mxu1 %v3538_v10  ;;  %2873 = vmatprep.subr.bf16.mxu0 %v3541_v42 }
 0x639   :  { %2833 = vmatpush1.bf16.msra.mxu1 %v3536_v43  ;;  %2874 = vmatpush1.bf16.msra.mxu0 %v3539_v12 }
 0x63a   :  { %2834 = vmatprep.subr.bf16.mxu1 %v3544_v44  ;;  %2875 = vmatprep.subr.bf16.mxu0 %v3547_v45 }
 0x63d   :  { %2835 = vmatpush1.bf16.msra.mxu1 %v3542_v49  ;;  %2876 = vmatpush1.bf16.msra.mxu0 %v3545_v50 }
 0x63e   :  { %2836 = vmatprep.subr.bf16.mxu1 %v3550_v51  ;;  %2877 = vmatprep.subr.bf16.mxu0 %v3553_v52  ;;  %v3596_v51 = vld [vmem:[#allocation9 + $0x200] ss:$8 sps:$4 sm:$0xff]  }
 0x63f   :  { %v3599_v52 = vld [vmem:[#allocation9 + $0x300] ss:$8 sps:$4 sm:$0xff]  }
 0x641   :  { %2837 = vmatpush1.bf16.msra.mxu1 %v3548_v53  ;;  %2878 = vmatpush1.bf16.msra.mxu0 %v3551_v54 }
 0x642   :  { %2838 = vmatprep.subr.bf16.mxu1 %v3556_v55  ;;  %2879 = vmatprep.subr.bf16.mxu0 %v3559_v56  ;;  %v3604_v55 = vld [vmem:[#allocation9 + $0x214] ss:$8 sps:$4 sm:$0xff]  }
 0x643   :  { %v3607_v56 = vld [vmem:[#allocation9 + $0x314] ss:$8 sps:$4 sm:$0xff]  }
 0x645   :  { %2839 = vmatpush1.bf16.msra.mxu1 %v3554_v57  ;;  %2880 = vmatpush1.bf16.msra.mxu0 %v3557_v58  ;;  %v3602_v57 = vld [vmem:[#allocation9 + $0x210] ss:$8 sps:$4 sm:$0xff]  }
 0x646   :  { %2840 = vmatprep.subr.bf16.mxu1 %v3562_v59  ;;  %2881 = vmatprep.subr.bf16.mxu0 %v3565_v2  ;;  %v3605_v58 = vld [vmem:[#allocation9 + $0x310] ss:$8 sps:$4 sm:$0xff]   ;;  %v3610_v59 = vld [vmem:[#allocation9 + $0x224] ss:$8 sps:$4 sm:$0xff]  }
 0x647   :  { %v3613_v2 = vld [vmem:[#allocation9 + $0x324] ss:$8 sps:$4 sm:$0xff]  }
 0x649   :  { %2841 = vmatpush1.bf16.msra.mxu1 %v3560_v3  ;;  %2882 = vmatpush1.bf16.msra.mxu0 %v3563_v4  ;;  %v3608_v3 = vld [vmem:[#allocation9 + $0x220] ss:$8 sps:$4 sm:$0xff]  }
 0x64a   :  { %2842 = vmatprep.subr.bf16.mxu1 %v3568_v7  ;;  %2883 = vmatprep.subr.bf16.mxu0 %v3571_v8  ;;  %v3611_v4 = vld [vmem:[#allocation9 + $0x320] ss:$8 sps:$4 sm:$0xff]   ;;  %v3616_v7 = vld [vmem:[#allocation9 + $0x234] ss:$8 sps:$4 sm:$0xff]  }
 0x64b   :  { %v3619_v8 = vld [vmem:[#allocation9 + $0x334] ss:$8 sps:$4 sm:$0xff]  }
 0x64d   :  { %2843 = vmatpush1.bf16.msra.mxu1 %v3566_v9  ;;  %2884 = vmatpush1.bf16.msra.mxu0 %v3569_v11  ;;  %v3614_v9 = vld [vmem:[#allocation9 + $0x230] ss:$8 sps:$4 sm:$0xff]  }
 0x64e   :  { %2844 = vmatprep.subr.bf16.mxu1 %v3574_v13  ;;  %2885 = vmatprep.subr.bf16.mxu0 %v3577_v14  ;;  %v3617_v11 = vld [vmem:[#allocation9 + $0x330] ss:$8 sps:$4 sm:$0xff]   ;;  %v3622_v13 = vld [vmem:[#allocation9 + $0x244] ss:$8 sps:$4 sm:$0xff]  }
 0x64f   :  { %v3625_v14 = vld [vmem:[#allocation9 + $0x344] ss:$8 sps:$4 sm:$0xff]  }
 0x651   :  { %2845 = vmatpush1.bf16.msra.mxu1 %v3572_v15  ;;  %2886 = vmatpush1.bf16.msra.mxu0 %v3575_v0  ;;  %v3620_v15 = vld [vmem:[#allocation9 + $0x240] ss:$8 sps:$4 sm:$0xff]  }
 0x652   :  { %2846 = vmatprep.subr.bf16.mxu1 %v3580_v1  ;;  %2887 = vmatprep.subr.bf16.mxu0 %v3583_v16  ;;  %v3623_v0 = vld [vmem:[#allocation9 + $0x340] ss:$8 sps:$4 sm:$0xff]   ;;  %v3628_v1 = vld [vmem:[#allocation9 + $0x254] ss:$8 sps:$4 sm:$0xff]  }
 0x653   :  { %v3631_v16 = vld [vmem:[#allocation9 + $0x354] ss:$8 sps:$4 sm:$0xff]  }
 0x655   :  { %2847 = vmatpush1.bf16.msra.mxu1 %v3578_v60  ;;  %2888 = vmatpush1.bf16.msra.mxu0 %v3581_v61  ;;  %v3626_v60 = vld [vmem:[#allocation9 + $0x250] ss:$8 sps:$4 sm:$0xff]  }
 0x656   :  { %2848 = vmatprep.subr.bf16.mxu1 %v3586_v62  ;;  %2889 = vmatprep.subr.bf16.mxu0 %v3589_v63  ;;  %v3629_v61 = vld [vmem:[#allocation9 + $0x350] ss:$8 sps:$4 sm:$0xff]   ;;  %v3634_v62 = vld [vmem:[#allocation9 + $0x264] ss:$8 sps:$4 sm:$0xff]  }
 0x657   :  { %v3637_v63 = vld [vmem:[#allocation9 + $0x364] ss:$8 sps:$4 sm:$0xff]  }
 0x659   :  { %2849 = vmatpush1.bf16.msra.mxu1 %v3584_v17  ;;  %2890 = vmatpush1.bf16.msra.mxu0 %v3587_v19  ;;  %v3632_v17 = vld [vmem:[#allocation9 + $0x260] ss:$8 sps:$4 sm:$0xff]  }
 0x65a   :  { %2850 = vmatprep.subr.bf16.mxu1 %v3592_v5  ;;  %2891 = vmatprep.subr.bf16.mxu0 %v3595_v6  ;;  %v3635_v19 = vld [vmem:[#allocation9 + $0x360] ss:$8 sps:$4 sm:$0xff]   ;;  %v3640_v5 = vld [vmem:[#allocation9 + $0x274] ss:$8 sps:$4 sm:$0xff]  }
 0x65b   :  { %v3643_v6 = vld [vmem:[#allocation9 + $0x374] ss:$8 sps:$4 sm:$0xff]  }
 0x65d   :  { %2851 = vmatpush1.bf16.msra.mxu1 %v3590_v20  ;;  %2892 = vmatpush1.bf16.msra.mxu0 %v3593_v21  ;;  %v3638_v20 = vld [vmem:[#allocation9 + $0x270] ss:$8 sps:$4 sm:$0xff]  }
 0x65e   :  { %2902 = vmatprep.subr.bf16.mxu1 %v3598_v22  ;;  %2943 = vmatprep.subr.bf16.mxu0 %v3601_v23  ;;  %v3641_v21 = vld [vmem:[#allocation9 + $0x370] ss:$8 sps:$4 sm:$0xff]   ;;  %v3646_v22 = vld [vmem:[#allocation9 + $0x284] ss:$8 sps:$4 sm:$0xff]  }
 0x65f   :  { %v3649_v23 = vld [vmem:[#allocation9 + $0x384] ss:$8 sps:$4 sm:$0xff]  }
 0x6b3   :  { %v1894_v33 = vpop.f32.mrb[4].mxu1  ;;  %v1935_v18 = vpop.f32.mrb[8].mxu0 }
 0x6b4   :  { %v1895_v34 = vadd.f32 %v1894_v33, %v1183_v27  ;;  %v1936_v35 = vadd.f32 %v1935_v18, %v1191_v30  ;;  %v1896_v36 = vpop.f32.mrb[5].mxu1  ;;  %v1937_v37 = vpop.f32.mrb[9].mxu0  ;;  %v3652_v27 = vld [vmem:[#allocation9 + $0x294] ss:$8 sps:$4 sm:$0xff]   ;;  %v3658_v33 = vld [vmem:[#allocation9 + $0x2a4] ss:$8 sps:$4 sm:$0xff]  }
 0x6b5   :  { %v1897_v38 = vadd.f32 %v1896_v36, %v1187_v31  ;;  %v1938_v39 = vadd.f32 %v1937_v37, %v1195_v32  ;;  %v1898_v40 = vpop.f32.mrb[6].mxu1  ;;  %v1939_v41 = vpop.f32.mrb[10].mxu0  ;;  %v3655_v30 = vld [vmem:[#allocation9 + $0x394] ss:$8 sps:$4 sm:$0xff]   ;;  %v3650_v31 = vld [vmem:[#allocation9 + $0x290] ss:$8 sps:$4 sm:$0xff]  }
 0x6b6   :  { %v2024_v10 = vmax.f32 %v1895_v34, 0.0  ;;  %v2026_v42 = vmax.f32 %v1936_v35, 0.0  ;;  %v1899_v43 = vpop.f32.mrb[7].mxu1  ;;  %v1940_v12 = vpop.f32.mrb[11].mxu0  ;;  %v3653_v32 = vld [vmem:[#allocation9 + $0x390] ss:$8 sps:$4 sm:$0xff]  }
 0x6b7   :  { %v2025_v44 = vmax.f32 %v1897_v38, 0.0  ;;  %v2027_v45 = vmax.f32 %v1938_v39, 0.0  ;;  %v3661_v18 = vld [vmem:[#allocation9 + $0x3a4] ss:$8 sps:$4 sm:$0xff]   ;;  %v3656_v34 = vld [vmem:[#allocation9 + $0x2a0] ss:$8 sps:$4 sm:$0xff]  }
 0x6b8   :  { %v2032_v53 = vpack.c.bf16 %v2024_v10, %v2024_v10  ;;  %v2034_v54 = vpack.c.bf16 %v2026_v42, %v2026_v42  ;;  %v3659_v35 = vld [vmem:[#allocation9 + $0x3a0] ss:$8 sps:$4 sm:$0xff]   ;;  %v3664_v36 = vld [vmem:[#allocation9 + $0x2b4] ss:$8 sps:$4 sm:$0xff]   ;;  %v3662_v38 = vld [vmem:[#allocation9 + $0x2b0] ss:$8 sps:$4 sm:$0xff]  }
 0x6b9   :  { %v2033_v49 = vpack.c.bf16 %v2025_v44, %v2025_v44  ;;  %v2035_v50 = vpack.c.bf16 %v2027_v45, %v2027_v45  ;;  %v3667_v37 = vld [vmem:[#allocation9 + $0x3b4] ss:$8 sps:$4 sm:$0xff]   ;;  %v3665_v39 = vld [vmem:[#allocation9 + $0x3b0] ss:$8 sps:$4 sm:$0xff]   ;;  %v3670_v40 = vld [vmem:[#allocation9 + $0x2c4] ss:$8 sps:$4 sm:$0xff]  }
 0x6ba   :  { %v3673_v41 = vld [vmem:[#allocation9 + $0x3c4] ss:$8 sps:$4 sm:$0xff]   ;;  %v3668_v10 = vld [vmem:[#allocation9 + $0x2c0] ss:$8 sps:$4 sm:$0xff]   ;;  %v3676_v43 = vld [vmem:[#allocation9 + $0x2d4] ss:$8 sps:$4 sm:$0xff]  }
 0x6bb   :  { %2852 = vmatprep.mubr.bf16.mxu1 %v2033_v49  ;;  %2893 = vmatprep.mubr.bf16.mxu0 %v2035_v50  ;;  %v3671_v42 = vld [vmem:[#allocation9 + $0x3c0] ss:$8 sps:$4 sm:$0xff]   ;;  %v3679_v12 = vld [vmem:[#allocation9 + $0x3d4] ss:$8 sps:$4 sm:$0xff]   ;;  %v1198_v44 = vsub.s32 4, %v4023_v46  ;;  %v1206_v45 = vsub.s32 6, %v4023_v46 }
 0x6bc   :  { %2853 = vmatmul.mubr.bf16.vlgmr.msra.gmra.mrb[12].mxu1 %v2032_v53  ;;  %2894 = vmatmul.mubr.bf16.vlgmr.msra.gmra.mrb[16].mxu0 %v2034_v54  ;;  %v3674_v49 = vld [vmem:[#allocation9 + $0x2d0] ss:$8 sps:$4 sm:$0xff]   ;;  %v3682_v53 = vld [vmem:[#allocation9 + $0x2e4] ss:$8 sps:$4 sm:$0xff]  }
 0x6bd   :  { %2903 = vmatpush1.bf16.msra.mxu1 %v3596_v51  ;;  %2944 = vmatpush1.bf16.msra.mxu0 %v3599_v52  ;;  %v3677_v50 = vld [vmem:[#allocation9 + $0x3d0] ss:$8 sps:$4 sm:$0xff]   ;;  %v1202_v51 = vsub.s32 5, %v4023_v46  ;;  %v1210_v52 = vsub.s32 7, %v4023_v46  ;;  %v3685_v54 = vld [vmem:[#allocation9 + $0x3e4] ss:$8 sps:$4 sm:$0xff]  }
 0x6be   :  { %2904 = vmatprep.subr.bf16.mxu1 %v3604_v55  ;;  %2945 = vmatprep.subr.bf16.mxu0 %v3607_v56  ;;  %v1199_v55 = vrot.slane %v4155_v25, %v1198_v44  ;;  %v1207_v56 = vrot.slane %v4155_v25, %v1206_v45  ;;  %v3691_v46 = vld [vmem:[#allocation9 + $0x3f4] ss:$8 sps:$4 sm:$0xff]  }
 0x6c1   :  { %2905 = vmatpush1.bf16.msra.mxu1 %v3602_v57  ;;  %2946 = vmatpush1.bf16.msra.mxu0 %v3605_v58  ;;  %v1203_v57 = vrot.slane %v4155_v25, %v1202_v51  ;;  %v1211_v58 = vrot.slane %v4155_v25, %v1210_v52  ;;  %v3689_v25 = vld [vmem:[#allocation9 + $0x3f0] ss:$8 sps:$4 sm:$0xff]  }
 0x6c2   :  { %2906 = vmatprep.subr.bf16.mxu1 %v3610_v59  ;;  %2947 = vmatprep.subr.bf16.mxu0 %v3613_v2  ;;  %v3680_v59 = vld [vmem:[#allocation9 + $0x2e0] ss:$8 sps:$4 sm:$0xff]  }
 0x6c3   :  { %v3683_v2 = vld [vmem:[#allocation9 + $0x3e0] ss:$8 sps:$4 sm:$0xff]  }
 0x6c5   :  { %2907 = vmatpush1.bf16.msra.mxu1 %v3608_v3  ;;  %2948 = vmatpush1.bf16.msra.mxu0 %v3611_v4  ;;  %v3688_v3 = vld [vmem:[#allocation9 + $0x2f4] ss:$8 sps:$4 sm:$0xff]  }
 0x6c6   :  { %2908 = vmatprep.subr.bf16.mxu1 %v3616_v7  ;;  %2949 = vmatprep.subr.bf16.mxu0 %v3619_v8 }
 0x6c9   :  { %2909 = vmatpush1.bf16.msra.mxu1 %v3614_v9  ;;  %2950 = vmatpush1.bf16.msra.mxu0 %v3617_v11 }
 0x6ca   :  { %2910 = vmatprep.subr.bf16.mxu1 %v3622_v13  ;;  %2951 = vmatprep.subr.bf16.mxu0 %v3625_v14 }
 0x6cd   :  { %2911 = vmatpush1.bf16.msra.mxu1 %v3620_v15  ;;  %2952 = vmatpush1.bf16.msra.mxu0 %v3623_v0 }
 0x6ce   :  { %2912 = vmatprep.subr.bf16.mxu1 %v3628_v1  ;;  %2953 = vmatprep.subr.bf16.mxu0 %v3631_v16  ;;  %v3686_v16 = vld [vmem:[#allocation9 + $0x2f0] ss:$8 sps:$4 sm:$0xff]  }
 0x6d1   :  { %2913 = vmatpush1.bf16.msra.mxu1 %v3626_v60  ;;  %2954 = vmatpush1.bf16.msra.mxu0 %v3629_v61 }
 0x6d2   :  { %2914 = vmatprep.subr.bf16.mxu1 %v3634_v62  ;;  %2955 = vmatprep.subr.bf16.mxu0 %v3637_v63 }
 0x6d5   :  { %2915 = vmatpush1.bf16.msra.mxu1 %v3632_v17  ;;  %2956 = vmatpush1.bf16.msra.mxu0 %v3635_v19 }
 0x6d6   :  { %2916 = vmatprep.subr.bf16.mxu1 %v3640_v5  ;;  %2957 = vmatprep.subr.bf16.mxu0 %v3643_v6 }
 0x6d9   :  { %2917 = vmatpush1.bf16.msra.mxu1 %v3638_v20  ;;  %2958 = vmatpush1.bf16.msra.mxu0 %v3641_v21 }
 0x6da   :  { %2918 = vmatprep.subr.bf16.mxu1 %v3646_v22  ;;  %2959 = vmatprep.subr.bf16.mxu0 %v3649_v23  ;;  %v2168_v22 = vld [vmem:[%s4203_s18] sm:$0x3] }
 0x6db   :  { %v2173_v23 = vrot.slane %v2168_v22, %v4026_v47 }
 0x6dd   :  { %2919 = vmatpush1.bf16.msra.mxu1 %v3644_v24  ;;  %2960 = vmatpush1.bf16.msra.mxu0 %v3647_v26  ;;  %v2177_v24 = vrot.slane %v2168_v22, %v4029_v48 }
 0x6de   :  { %2920 = vmatprep.subr.bf16.mxu1 %v3652_v27  ;;  %2961 = vmatprep.subr.bf16.mxu0 %v3655_v30 }
 0x6e1   :  { %2921 = vmatpush1.bf16.msra.mxu1 %v3650_v31  ;;  %2962 = vmatpush1.bf16.msra.mxu0 %v3653_v32 }
 0x6e2   :  { %2922 = vmatprep.subr.bf16.mxu1 %v3658_v33  ;;  %2963 = vmatprep.subr.bf16.mxu0 %v3661_v18 }
 0x6e5   :  { %2923 = vmatpush1.bf16.msra.mxu1 %v3656_v34  ;;  %2964 = vmatpush1.bf16.msra.mxu0 %v3659_v35 }
 0x6e6   :  { %2924 = vmatprep.subr.bf16.mxu1 %v3664_v36  ;;  %2965 = vmatprep.subr.bf16.mxu0 %v3667_v37 }
 0x6e9   :  { %2925 = vmatpush1.bf16.msra.mxu1 %v3662_v38  ;;  %2966 = vmatpush1.bf16.msra.mxu0 %v3665_v39 }
 0x6ea   :  { %2926 = vmatprep.subr.bf16.mxu1 %v3670_v40  ;;  %2967 = vmatprep.subr.bf16.mxu0 %v3673_v41 }
 0x6ed   :  { %2927 = vmatpush1.bf16.msra.mxu1 %v3668_v10  ;;  %2968 = vmatpush1.bf16.msra.mxu0 %v3671_v42 }
 0x6ee   :  { %2928 = vmatprep.subr.bf16.mxu1 %v3676_v43  ;;  %2969 = vmatprep.subr.bf16.mxu0 %v3679_v12 }
 0x6f1   :  { %2929 = vmatpush1.bf16.msra.mxu1 %v3674_v49  ;;  %2970 = vmatpush1.bf16.msra.mxu0 %v3677_v50 }
 0x6f2   :  { %2930 = vmatprep.subr.bf16.mxu1 %v3682_v53  ;;  %2971 = vmatprep.subr.bf16.mxu0 %v3685_v54 }
 0x6f3   :  { %v1976_v4 = vpop.f32.mrb[8].mxu1  ;;  %v2017_v7 = vpop.f32.mrb[12].mxu0 }
 0x6f4   :  { %v1977_v8 = vadd.f32 %v1976_v4, %v1199_v55  ;;  %v2018_v9 = vadd.f32 %v2017_v7, %v1207_v56  ;;  %v1978_v11 = vpop.f32.mrb[9].mxu1  ;;  %v2019_v13 = vpop.f32.mrb[13].mxu0 }
 0x6f5   :  { %v1979_v14 = vadd.f32 %v1978_v11, %v1203_v57  ;;  %v2020_v15 = vadd.f32 %v2019_v13, %v1211_v58  ;;  %v1980_v0 = vpop.f32.mrb[10].mxu1  ;;  %v2021_v1 = vpop.f32.mrb[14].mxu0  ;;  %2931 = vmatpush1.bf16.msra.mxu1 %v3680_v59  ;;  %2972 = vmatpush1.bf16.msra.mxu0 %v3683_v2 }
 0x6f6   :  { %v2028_v60 = vmax.f32 %v1977_v8, 0.0  ;;  %v2030_v61 = vmax.f32 %v2018_v9, 0.0  ;;  %v1981_v62 = vpop.f32.mrb[11].mxu1  ;;  %v2022_v63 = vpop.f32.mrb[15].mxu0  ;;  %2932 = vmatprep.subr.bf16.mxu1 %v3688_v3  ;;  %2973 = vmatprep.subr.bf16.mxu0 %v3691_v46 }
 0x6f7   :  { %v2029_v17 = vmax.f32 %v1979_v14, 0.0  ;;  %v2031_v19 = vmax.f32 %v2020_v15, 0.0 }
 0x6f8   :  { %v2036_v20 = vpack.c.bf16 %v2028_v60, %v2028_v60  ;;  %v2038_v21 = vpack.c.bf16 %v2030_v61, %v2030_v61 }
 0x6f9   :  { %v2037_v5 = vpack.c.bf16 %v2029_v17, %v2029_v17  ;;  %v2039_v6 = vpack.c.bf16 %v2031_v19, %v2031_v19  ;;  %2933 = vmatpush1.bf16.msra.mxu1 %v3686_v16  ;;  %2974 = vmatpush1.bf16.msra.mxu0 %v3689_v25 }
 0x6fb   :  { %2934 = vmatprep.mubr.bf16.mxu1 %v2037_v5  ;;  %2975 = vmatprep.mubr.bf16.mxu0 %v2039_v6 }
 0x6fc   :  { %2935 = vmatmul.mubr.bf16.vlgmr.msra.gmra.mrb[16].mxu1 %v2036_v20  ;;  %2976 = vmatmul.mubr.bf16.vlgmr.msra.gmra.mrb[20].mxu0 %v2038_v21 }
 0x78f   :  { %v2854_v26 = vpop.f32.mrb[12].mxu1  ;;  %v2895_v27 = vpop.f32.mrb[16].mxu0 }
 0x790   :  { %v2855_v30 = vadd.f32 %v2854_v26, %v2173_v23  ;;  %v2856_v31 = vpop.f32.mrb[13].mxu1  ;;  %v2897_v32 = vpop.f32.mrb[17].mxu0 }
 0x791   :  { %v2857_v33 = vadd.f32 %v2856_v31, %v2177_v24  ;;  %v2858_v18 = vpop.f32.mrb[14].mxu1  ;;  %v2899_v34 = vpop.f32.mrb[18].mxu0 }
 0x792   :  { %v2896_v35 = vadd.f32 %v2895_v27, %v2855_v30  ;;  %v2859_v36 = vpop.f32.mrb[15].mxu1  ;;  %v2900_v37 = vpop.f32.mrb[19].mxu0 }
 0x793   :  { %v2898_v38 = vadd.f32 %v2897_v32, %v2857_v33 }
 0x7cf   :  { %v2936_v39 = vpop.f32.mrb[16].mxu1  ;;  %v2977_v40 = vpop.f32.mrb[20].mxu0 }
 0x7d0   :  { %v2937_v41 = vadd.f32 %v2936_v39, %v2896_v35  ;;  %v2938_v10 = vpop.f32.mrb[17].mxu1  ;;  %v2979_v42 = vpop.f32.mrb[21].mxu0 }
 0x7d1   :  { %v2939_v47 = vadd.f32 %v2938_v10, %v2898_v38  ;;  %v2940_v43 = vpop.f32.mrb[18].mxu1  ;;  %v2981_v48 = vpop.f32.mrb[22].mxu0 }
 0x7d2   :  { %v2978_v12 = vadd.f32 %v2977_v40, %v2937_v41  ;;  %v2941_v44 = vpop.f32.mrb[19].mxu1  ;;  %v2982_v45 = vpop.f32.mrb[23].mxu0 }
 0x7d3   :  { %v2980_v49 = vadd.f32 %v2979_v42, %v2939_v47 }
 0x7d4   :  { %v2984_v50 = vadd.f32 %v2978_v12, %v4116_v28 }
 0x7d5   :  { %v2985_v51 = vadd.f32 %v2980_v49, %v4119_v29 }
 0x7d6   :  { %2986 = vst [vmem:[%s4204_s19] sm:$0xff] %v2984_v50 }
 0x7d7   :  { %2987 = vst [vmem:[%s4204_s19 + $0x8] sm:$0xff] %v2985_v51 }
 0x7d8   :  { %2992 = vsyncpa [#allocation3], 1 }
 0x7d9   :  { %2993 = vsyncpa [#allocation5], 1 }
 0x7da   :  { %2994 = vsyncpa [#allocation8], 1 }

</bundles_post_ra>
